<compile_context>
chip_gen: v7x
topology: tpu7x:2x2x1
jax: 0.10.0
libtpu: 0.0.40
codegen_flags: <defaults>
</compile_context>

<pallas_src>
import functools

import jax
import jax.numpy as jnp
from jax.experimental import pallas as pl
from jax.experimental.pallas import tpu as pltpu

EPS = 1e-5


def _round_up(v, m):
    return ((v + m - 1) // m) * m


def _glu_kernel(x_ref, w_ref, par_ref, o_ref, *, vbs, od, od_p):
    # x_ref:   (rows, inp_dim)      rows = chunks_per_step * vbs
    # w_ref:   (inp_dim, 2*od_p)    [W_a^T | W_g^T], zero-padded lanes
    # par_ref: (2, 2*od_p)          row0 = gamma, row1 = beta (both halves)
    # o_ref:   (rows, od)           unpadded output block
    rows = x_ref.shape[0]
    n_sub = rows // vbs
    inv_n = jnp.float32(1.0 / vbs)

    # One fused MXU matmul over both GLU halves (N = 2*od_p), f32 accumulation.
    y = jnp.dot(x_ref[...], w_ref[...], preferred_element_type=jnp.float32)
    par = par_ref[...].astype(jnp.float32)

    def gbn_half(col0):
        # Ghost batch norm on lanes [col0, col0+od_p) — 128-aligned slice.
        y3 = y[:, col0:col0 + od_p].reshape(n_sub, vbs, od_p)
        gamma = par[0, col0:col0 + od_p].reshape(1, 1, od_p)
        beta = par[1, col0:col0 + od_p].reshape(1, 1, od_p)
        # One-pass stats per virtual batch of `vbs` rows.
        s1 = jnp.sum(y3, axis=1, keepdims=True)
        s2 = jnp.sum(y3 * y3, axis=1, keepdims=True)
        mean = s1 * inv_n
        var = s2 * inv_n - mean * mean
        # Fold the BN affine into scale/shift: 2 elementwise ops per element.
        scale = gamma * jax.lax.rsqrt(var + EPS)
        shift = beta - mean * scale
        return (y3 * scale + shift).reshape(rows, od_p)

    a_hat = gbn_half(0)
    g_hat = gbn_half(od_p)
    out = a_hat * jax.nn.sigmoid(g_hat)

    if od == od_p:
        o_ref[...] = out.astype(o_ref.dtype)
    else:
        # Masked store of the first `od` lanes (trace-time branch).
        o_ref[...] = out[:, :od].astype(o_ref.dtype)


def _tpu_vmem_and_cores():
    """Best-effort query of per-core VMEM capacity and TensorCores per chip."""
    vmem_cap = 128 << 20
    cores = 1
    try:
        info = pltpu.get_tpu_info()
        cap = getattr(info, "vmem_capacity_bytes", None)
        if cap:
            vmem_cap = int(cap)
        for name in ("num_cores", "num_tensorcores", "tensorcore_count",
                     "cores_per_chip"):
            v = getattr(info, name, None)
            if v:
                cores = int(v)
                break
    except Exception:
        pass
    if cores == 1 and vmem_cap <= (64 << 20):
        cores = 2  # 64 MiB-VMEM generation (v7x) has 2 TensorCores per chip.
    return vmem_cap, cores


def _pick_chunks_per_step(n_chunks, vbs, max_rows, num_cores):
    """Largest divisor of n_chunks whose row block fits the VMEM budget."""
    divisors = [d for d in range(1, n_chunks + 1) if n_chunks % d == 0]
    fitting = [d for d in divisors if d * vbs <= max_rows] or [1]
    if num_cores >= 2 and n_chunks >= 2:
        # Multi-TC chip: keep >=2 grid steps so both cores get work, and
        # prefer an even step count so no core idles on a tail step.
        multi = [d for d in fitting if n_chunks // d >= 2]
        if multi:
            even = [d for d in multi if (n_chunks // d) % 2 == 0]
            return max(even if even else multi)
    # Single-TC chip: extra grid steps are pure loop overhead — take the
    # biggest block that fits (a single step is fine).
    return max(fitting)


def glu_forward(x, w, b, gamma, beta, *, out_dim, vbs,
                matmul_dtype=jnp.bfloat16, target_rows=2048):
    """x: (B, inp_dim); w: (2*od, inp_dim); b, gamma, beta: (2*od,).

    `b` is accepted for interface parity but is mathematically redundant:
    ghost batch norm subtracts the per-feature chunk mean right after the
    linear layer, so a per-feature constant bias cancels exactly.
    (Training-mode / batch-stats BN only.)
    """
    del b
    B, inp_dim = x.shape
    od = out_dim
    assert w.shape[0] == 2 * od
    assert B % vbs == 0, "batch must be divisible by vbs (matches torch.chunk)"
    assert vbs % 8 == 0, "vbs must be a multiple of 8 for TPU sublane tiling"

    od_p = _round_up(od, 128)            # lane-aligned half width
    two_od_p = 2 * od_p
    inp_p = _round_up(inp_dim, 128)      # lanes x occupies once in VMEM
    n_chunks = B // vbs

    out_dtype = x.dtype
    mm_dtype = jnp.dtype(matmul_dtype) if matmul_dtype is not None else jnp.dtype(x.dtype)
    elt_in = mm_dtype.itemsize
    elt_out = jnp.dtype(out_dtype).itemsize

    # ---- generation-aware block sizing (lane-padding-aware VMEM estimate) ----
    vmem_cap, num_cores = _tpu_vmem_and_cores()
    budget = vmem_cap // 2                                  # leave headroom
    fixed = (_round_up(inp_dim, 8) * two_od_p * elt_in      # resident W^T (1 buf)
             + 8 * two_od_p * 4)                            # packed gamma/beta
    per_row = (2 * inp_p * elt_in                           # x (double-buffered)
               + 2 * _round_up(od, 128) * elt_out           # out (double-buffered)
               + two_od_p * 4                               # y (f32)
               + 2 * od_p * 4                               # a_hat / g_hat (f32)
               + 2 * od_p * 4)                              # slack for temporaries
    max_rows = max((budget - fixed) // per_row, vbs)
    max_rows = min(max_rows, target_rows)

    cps = _pick_chunks_per_step(n_chunks, vbs, max_rows, num_cores)
    rows = cps * vbs
    n_steps = n_chunks // cps

    need = fixed + rows * per_row
    vmem_limit = int(min(max(2 * need, 16 << 20), int(vmem_cap * 0.9)))

    # ---- layout plumbing (trace time): fused, transposed, lane-padded W ----
    wa_t = jnp.pad(w[:od, :].T, ((0, 0), (0, od_p - od)))
    wg_t = jnp.pad(w[od:, :].T, ((0, 0), (0, od_p - od)))
    w_cat = jnp.concatenate([wa_t, wg_t], axis=1).astype(mm_dtype)  # (inp, 2*od_p)

    def _pad(v):
        return jnp.pad(v, (0, od_p - od))
    params = jnp.stack(
        [jnp.concatenate([_pad(gamma[:od]), _pad(gamma[od:])]),
         jnp.concatenate([_pad(beta[:od]), _pad(beta[od:])])],
        axis=0,
    ).astype(jnp.float32)                                    # (2, 2*od_p)

    x_mm = x.astype(mm_dtype)

    kernel = functools.partial(_glu_kernel, vbs=vbs, od=od, od_p=od_p)

    return pl.pallas_call(
        kernel,
        out_shape=jax.ShapeDtypeStruct((B, od), out_dtype),
        grid=(n_steps,),
        in_specs=[
            pl.BlockSpec((rows, inp_dim), lambda i: (i, 0)),       # x super-block
            pl.BlockSpec((inp_dim, two_od_p), lambda i: (0, 0),
                         pipeline_mode=pl.Buffered(1)),            # resident W^T
            pl.BlockSpec((2, two_od_p), lambda i: (0, 0),
                         pipeline_mode=pl.Buffered(1)),            # gamma/beta
        ],
        out_specs=pl.BlockSpec((rows, od), lambda i: (i, 0)),      # unpadded out
        compiler_params=pltpu.CompilerParams(
            dimension_semantics=("parallel",),
            vmem_limit_bytes=vmem_limit,
        ),
    )(x_mm, w_cat, params)


def glu_reference(x, w, b, gamma, beta, *, out_dim, vbs):
    """Pure-JAX reference mirroring the PyTorch module (training mode)."""
    y = x @ w.T + b
    B = y.shape[0]
    chunks = jnp.split(y, B // vbs, axis=0)
    res = []
    for c in chunks:
        m = jnp.mean(c, axis=0, keepdims=True)
        v = jnp.mean((c - m) ** 2, axis=0, keepdims=True)
        res.append((c - m) / jnp.sqrt(v + EPS) * gamma + beta)
    y = jnp.concatenate(res, axis=0)
    return y[:, :out_dim] * jax.nn.sigmoid(y[:, out_dim:])


if __name__ == "__main__":
    # Small shapes consistent with the module: 8 virtual batches of 32 rows.
    B, inp_dim, out_dim, vbs = 256, 32, 16, 32

    key = jax.random.PRNGKey(0)
    kx, kw, kb, kg, kbe = jax.random.split(key, 5)

    x = jax.random.normal(kx, (B, inp_dim), dtype=jnp.float32)
    bound = 1.0 / (inp_dim ** 0.5)
    w = jax.random.uniform(kw, (2 * out_dim, inp_dim), jnp.float32, -bound, bound)
    b = jax.random.uniform(kb, (2 * out_dim,), jnp.float32, -bound, bound)
    gamma = 1.0 + 0.1 * jax.random.normal(kg, (2 * out_dim,), jnp.float32)
    beta = 0.1 * jax.random.normal(kbe, (2 * out_dim,), jnp.float32)

    ref = glu_reference(x, w, b, gamma, beta, out_dim=out_dim, vbs=vbs)

    # Fast path: bf16 matmul on the MXU (f32 accumulation + f32 GBN/gate math).
    out_bf16 = jax.block_until_ready(
        glu_forward(x, w, b, gamma, beta, out_dim=out_dim, vbs=vbs,
                    matmul_dtype=jnp.bfloat16))
    assert out_bf16.shape == (B, out_dim)
    assert jnp.allclose(out_bf16, ref, atol=3e-2, rtol=3e-2), "bf16 path mismatch"

    # f32 validation path (tight tolerance against the reference).
    out_f32 = jax.block_until_ready(
        glu_forward(x, w, b, gamma, beta, out_dim=out_dim, vbs=vbs,
                    matmul_dtype=None))
    assert out_f32.shape == (B, out_dim)
    assert jnp.allclose(out_f32, ref, atol=2e-5, rtol=2e-5), "f32 path mismatch"

    print("KERNEL_OK")
</pallas_src>

<mosaic_0001>
module attributes {stable_mosaic.version = 11 : i64} {
  func.func @_glu_kernel(%arg0: i32, %arg1: memref<256x32xbf16, #tpu.memory_space<vmem>>, %arg2: memref<32x256xbf16, #tpu.memory_space<vmem>>, %arg3: memref<2x256xf32, #tpu.memory_space<vmem>>, %arg4: memref<256x16xf32, #tpu.memory_space<vmem>>) attributes {dimension_semantics = [#tpu.dimension_semantics<parallel>], iteration_bounds = array<i64: 1>, scalar_prefetch = 0 : i64, scratch_operands = 0 : i64, tpu.core_type = #tpu.core_type<tc>, window_params = [{transform_indices = @transform_0, window_bounds = array<i64: 256, 32>}, {pipeline_mode = #tpu.pipeline_mode<synchronous>, transform_indices = @transform_1, window_bounds = array<i64: 32, 256>}, {pipeline_mode = #tpu.pipeline_mode<synchronous>, transform_indices = @transform_2, window_bounds = array<i64: 2, 256>}, {transform_indices = @transform_3, window_bounds = array<i64: 256, 16>}]} {
    %c0 = arith.constant 0 : index
    %c0_0 = arith.constant 0 : index
    %0 = vector.load %arg1[%c0, %c0_0] : memref<256x32xbf16, #tpu.memory_space<vmem>>, vector<256x32xbf16>
    %c0_1 = arith.constant 0 : index
    %c0_2 = arith.constant 0 : index
    %1 = vector.load %arg2[%c0_1, %c0_2] : memref<32x256xbf16, #tpu.memory_space<vmem>>, vector<32x256xbf16>
    %cst = arith.constant dense<0.000000e+00> : vector<256x256xf32>
    %2 = tpu.matmul %0, %1, %cst {dimension_numbers = #tpu.dot_dimension_numbers<[1], [0], [0], [1], [0, 0, 1, 1], [], []>} : vector<256x32xbf16>, vector<32x256xbf16>, vector<256x256xf32> -> vector<256x256xf32>
    %c0_3 = arith.constant 0 : index
    %c0_4 = arith.constant 0 : index
    %3 = vector.load %arg3[%c0_3, %c0_4] : memref<2x256xf32, #tpu.memory_space<vmem>>, vector<2x256xf32>
    %4 = vector.extract_strided_slice %2 {offsets = [0, 0], sizes = [256, 128], strides = [1, 1]} : vector<256x256xf32> to vector<256x128xf32>
    %5 = vector.shape_cast %4 : vector<256x128xf32> to vector<8x32x128xf32>
    %6 = vector.extract_strided_slice %3 {offsets = [0, 0], sizes = [1, 128], strides = [1, 1]} : vector<2x256xf32> to vector<1x128xf32>
    %7 = vector.shape_cast %6 : vector<1x128xf32> to vector<128xf32>
    %8 = vector.shape_cast %7 : vector<128xf32> to vector<1x1x128xf32>
    %9 = vector.extract_strided_slice %3 {offsets = [1, 0], sizes = [1, 128], strides = [1, 1]} : vector<2x256xf32> to vector<1x128xf32>
    %10 = vector.shape_cast %9 : vector<1x128xf32> to vector<128xf32>
    %11 = vector.shape_cast %10 : vector<128xf32> to vector<1x1x128xf32>
    %cst_5 = arith.constant dense<0.000000e+00> : vector<8x128xf32>
    %12 = vector.multi_reduction <add>, %5, %cst_5 [1] : vector<8x32x128xf32> to vector<8x128xf32>
    %13 = vector.shape_cast %12 : vector<8x128xf32> to vector<8x1x128xf32>
    %14 = arith.mulf %5, %5 : vector<8x32x128xf32>
    %cst_6 = arith.constant dense<0.000000e+00> : vector<8x128xf32>
    %15 = vector.multi_reduction <add>, %14, %cst_6 [1] : vector<8x32x128xf32> to vector<8x128xf32>
    %16 = vector.shape_cast %15 : vector<8x128xf32> to vector<8x1x128xf32>
    %cst_7 = arith.constant 3.125000e-02 : f32
    %17 = vector.broadcast %cst_7 : f32 to vector<8x1x128xf32>
    %18 = arith.mulf %13, %17 : vector<8x1x128xf32>
    %cst_8 = arith.constant 3.125000e-02 : f32
    %19 = vector.broadcast %cst_8 : f32 to vector<8x1x128xf32>
    %20 = arith.mulf %16, %19 : vector<8x1x128xf32>
    %21 = arith.mulf %18, %18 : vector<8x1x128xf32>
    %22 = arith.subf %20, %21 : vector<8x1x128xf32>
    %cst_9 = arith.constant 9.99999974E-6 : f32
    %23 = vector.broadcast %cst_9 : f32 to vector<8x1x128xf32>
    %24 = arith.addf %22, %23 : vector<8x1x128xf32>
    %25 = math.rsqrt %24 : vector<8x1x128xf32>
    %26 = vector.broadcast %8 : vector<1x1x128xf32> to vector<8x1x128xf32>
    %27 = arith.mulf %26, %25 : vector<8x1x128xf32>
    %28 = arith.mulf %18, %27 : vector<8x1x128xf32>
    %29 = vector.broadcast %11 : vector<1x1x128xf32> to vector<8x1x128xf32>
    %30 = arith.subf %29, %28 : vector<8x1x128xf32>
    %31 = vector.broadcast %27 : vector<8x1x128xf32> to vector<8x32x128xf32>
    %32 = arith.mulf %5, %31 : vector<8x32x128xf32>
    %33 = vector.broadcast %30 : vector<8x1x128xf32> to vector<8x32x128xf32>
    %34 = arith.addf %32, %33 : vector<8x32x128xf32>
    %35 = vector.shape_cast %34 : vector<8x32x128xf32> to vector<256x128xf32>
    %36 = vector.extract_strided_slice %2 {offsets = [0, 128], sizes = [256, 128], strides = [1, 1]} : vector<256x256xf32> to vector<256x128xf32>
    %37 = vector.shape_cast %36 : vector<256x128xf32> to vector<8x32x128xf32>
    %38 = vector.extract_strided_slice %3 {offsets = [0, 128], sizes = [1, 128], strides = [1, 1]} : vector<2x256xf32> to vector<1x128xf32>
    %39 = vector.shape_cast %38 : vector<1x128xf32> to vector<128xf32>
    %40 = vector.shape_cast %39 : vector<128xf32> to vector<1x1x128xf32>
    %41 = vector.extract_strided_slice %3 {offsets = [1, 128], sizes = [1, 128], strides = [1, 1]} : vector<2x256xf32> to vector<1x128xf32>
    %42 = vector.shape_cast %41 : vector<1x128xf32> to vector<128xf32>
    %43 = vector.shape_cast %42 : vector<128xf32> to vector<1x1x128xf32>
    %cst_10 = arith.constant dense<0.000000e+00> : vector<8x128xf32>
    %44 = vector.multi_reduction <add>, %37, %cst_10 [1] : vector<8x32x128xf32> to vector<8x128xf32>
    %45 = vector.shape_cast %44 : vector<8x128xf32> to vector<8x1x128xf32>
    %46 = arith.mulf %37, %37 : vector<8x32x128xf32>
    %cst_11 = arith.constant dense<0.000000e+00> : vector<8x128xf32>
    %47 = vector.multi_reduction <add>, %46, %cst_11 [1] : vector<8x32x128xf32> to vector<8x128xf32>
    %48 = vector.shape_cast %47 : vector<8x128xf32> to vector<8x1x128xf32>
    %cst_12 = arith.constant 3.125000e-02 : f32
    %49 = vector.broadcast %cst_12 : f32 to vector<8x1x128xf32>
    %50 = arith.mulf %45, %49 : vector<8x1x128xf32>
    %cst_13 = arith.constant 3.125000e-02 : f32
    %51 = vector.broadcast %cst_13 : f32 to vector<8x1x128xf32>
    %52 = arith.mulf %48, %51 : vector<8x1x128xf32>
    %53 = arith.mulf %50, %50 : vector<8x1x128xf32>
    %54 = arith.subf %52, %53 : vector<8x1x128xf32>
    %cst_14 = arith.constant 9.99999974E-6 : f32
    %55 = vector.broadcast %cst_14 : f32 to vector<8x1x128xf32>
    %56 = arith.addf %54, %55 : vector<8x1x128xf32>
    %57 = math.rsqrt %56 : vector<8x1x128xf32>
    %58 = vector.broadcast %40 : vector<1x1x128xf32> to vector<8x1x128xf32>
    %59 = arith.mulf %58, %57 : vector<8x1x128xf32>
    %60 = arith.mulf %50, %59 : vector<8x1x128xf32>
    %61 = vector.broadcast %43 : vector<1x1x128xf32> to vector<8x1x128xf32>
    %62 = arith.subf %61, %60 : vector<8x1x128xf32>
    %63 = vector.broadcast %59 : vector<8x1x128xf32> to vector<8x32x128xf32>
    %64 = arith.mulf %37, %63 : vector<8x32x128xf32>
    %65 = vector.broadcast %62 : vector<8x1x128xf32> to vector<8x32x128xf32>
    %66 = arith.addf %64, %65 : vector<8x32x128xf32>
    %67 = vector.shape_cast %66 : vector<8x32x128xf32> to vector<256x128xf32>
    %68 = arith.negf %67 : vector<256x128xf32>
    %69 = math.exp %68 : vector<256x128xf32>
    %cst_15 = arith.constant 1.000000e+00 : f32
    %70 = vector.broadcast %cst_15 : f32 to vector<256x128xf32>
    %71 = arith.addf %70, %69 : vector<256x128xf32>
    %72 = arith.divf %70, %71 : vector<256x128xf32>
    %73 = arith.mulf %35, %72 : vector<256x128xf32>
    %74 = vector.extract_strided_slice %73 {offsets = [0, 0], sizes = [256, 16], strides = [1, 1]} : vector<256x128xf32> to vector<256x16xf32>
    %c0_16 = arith.constant 0 : index
    %c0_17 = arith.constant 0 : index
    %75 = vector.load %arg4[%c0_16, %c0_17] : memref<256x16xf32, #tpu.memory_space<vmem>>, vector<256x16xf32>
    tpu.vector_store %arg4[%c0_16, %c0_17], %74 {strides = array<i32>} : memref<256x16xf32, #tpu.memory_space<vmem>>, vector<256x16xf32>,
    return
  }
  func.func @transform_0(%arg0: i32) -> (i32, i32) {
    %c0_i32 = arith.constant 0 : i32
    %c0_i32_0 = arith.constant 0 : i32
    return %arg0, %c0_i32 : i32, i32
  }
  func.func @transform_1(%arg0: i32) -> (i32, i32) {
    %c0_i32 = arith.constant 0 : i32
    %c0_i32_0 = arith.constant 0 : i32
    %c0_i32_1 = arith.constant 0 : i32
    return %c0_i32, %c0_i32_0 : i32, i32
  }
  func.func @transform_2(%arg0: i32) -> (i32, i32) {
    %c0_i32 = arith.constant 0 : i32
    %c0_i32_0 = arith.constant 0 : i32
    %c0_i32_1 = arith.constant 0 : i32
    return %c0_i32, %c0_i32_0 : i32, i32
  }
  func.func @transform_3(%arg0: i32) -> (i32, i32) {
    %c0_i32 = arith.constant 0 : i32
    %c0_i32_0 = arith.constant 0 : i32
    return %arg0, %c0_i32 : i32, i32
  }
}

</mosaic_0001>

<bundles_post_ra>
// kernel: tpu_custom_call.1
= control target key start
LH: loop header
LB: loop body
LE: loop exit
PB: predicated region body
PF: predicated region fallthrough
CT: control target
= control target key end

     0   :  { %v1827_v1 = vmov 0   ;;  %vm151_vm0 = vcmask 261120   ;;  %v1828_v21 = vmov 1983009808   ;;  %v645_v23 = vlaneseq  ;;  %s2790_s1 = inlined_call_operand.vmem [shape: bf16[32,256], index: 1, kind: input, shape index: {}]   ;;  %s2791_s0 = inlined_call_operand.vmem [shape: bf16[256,32], index: 0, kind: input, shape index: {}]   ;;  %s2792_s2 = inlined_call_operand.vmem [shape: f32[2,256], index: 2, kind: input, shape index: {}]   ;;  %s2793_s3 = inlined_call_operand.vmem [shape: f32[256,16], index: 3, kind: output, shape index: {}]  }
   0x1   :  { %v1644_v0 = vld [vmem:[%s2790_s1 + $0x4] ss:$8 sps:$4 sm:$0xff]   ;;  %232 = vmatprep.mubr.bf16.mxu0 %v1827_v1  ;;  %312 = vmatprep.mubr.bf16.mxu1 %v1827_v1  ;;  %v1646_v2 = vld [vmem:[%s2790_s1] ss:$8 sps:$4 sm:$0xff]   ;;  %v1647_v3 = vld [vmem:[%s2790_s1 + $0x14] ss:$8 sps:$4 sm:$0xff]   ;;  %v643_v22 = vunpack.c.l.s4 %v1828_v21 }
   0x2   :  { %200 = vmatprep.subr.bf16.mxu0 %v1644_v0  ;;  %1638 = vmatprep.subr.bf16.mxu1 %v1644_v0  ;;  %v1649_v4 = vld [vmem:[%s2790_s1 + $0x10] ss:$8 sps:$4 sm:$0xff]   ;;  %v1650_v5 = vld [vmem:[%s2791_s0] sm:$0xff]   ;;  %v1652_v7 = vld [vmem:[%s2791_s0 + $0x8] sm:$0xff]   ;;  %v646_v29 = vshrl.u32 %v645_v23, 7  ;;  %vm1533_vm1 = vcmask 130048  }
   0x3   :  { %201 = vmatpush1.bf16.msra.mxu0 %v1646_v2  ;;  %1640 = vmatpush1.bf16.msra.mxu1 %v1646_v2  ;;  %v1651_v6 = vld [vmem:[%s2791_s0 + $0x40] sm:$0xff]   ;;  %v1653_v8 = vld [vmem:[%s2791_s0 + $0x48] sm:$0xff]   ;;  %v1654_v9 = vld [vmem:[%s2791_s0 + $0x10] sm:$0xff]   ;;  %v644_v28 = vunpack.c.0.s8 %v643_v22 }
   0x4   :  { %202 = vmatprep.subr.bf16.mxu0 %v1647_v3  ;;  %1639 = vmatprep.subr.bf16.mxu1 %v1647_v3  ;;  %v1655_v10 = vld [vmem:[%s2791_s0 + $0x50] sm:$0xff]   ;;  %v1656_v11 = vld [vmem:[%s2791_s0 + $0x18] sm:$0xff]   ;;  %v1658_v13 = vld [vmem:[%s2791_s0 + $0x20] sm:$0xff]   ;;  %v1976_v54 = vsub.s32 0, %v646_v29  ;;  %v1978_v55 = vsub.s32 1, %v646_v29 }
   0x5   :  { %v1657_v12 = vld [vmem:[%s2791_s0 + $0x58] sm:$0xff]   ;;  %v1659_v14 = vld [vmem:[%s2791_s0 + $0x60] sm:$0xff]   ;;  %v1660_v15 = vld [vmem:[%s2791_s0 + $0x28] sm:$0xff]   ;;  %v1974_v53 = vsub.s32 %v644_v28, %v646_v29 }
   0x6   :  { %v1661_v16 = vld [vmem:[%s2791_s0 + $0x68] sm:$0xff]   ;;  %v1662_v17 = vld [vmem:[%s2791_s0 + $0x30] sm:$0xff]   ;;  %v1664_v19 = vld [vmem:[%s2791_s0 + $0x38] sm:$0xff]  }
   0x7   :  { %203 = vmatpush1.bf16.msra.mxu0 %v1649_v4  ;;  %1641 = vmatpush1.bf16.msra.mxu1 %v1649_v4  ;;  %v1663_v18 = vld [vmem:[%s2791_s0 + $0x70] sm:$0xff]   ;;  %v1665_v20 = vld [vmem:[%s2791_s0 + $0x78] sm:$0xff]   ;;  %v1968_v48 = vld [vmem:[%s2792_s2] sm:$0xf] }
   0x8   :  { %v1981_v56 = vrot.slane %v1968_v48, 2 }
   0xa   :  { %1590 = vmatmul.mubr.msk.bf16.vlgmr.msra.gmra.mrb[0].mxu0 %vm151_vm0, %v1650_v5  ;;  %1598 = vmatmul.mubr.msk.bf16.vlgmr.msra.gmra.mrb[0].mxu1 %vm151_vm0, %v1651_v6  ;;  %2842 = vst [vmem:[#allocation2_spill] sm:$0xff] %v1981_v56 }
   0xb   :  { %242 = vmatprep.mubr.bf16.mxu0 %v1827_v1  ;;  %322 = vmatprep.mubr.bf16.mxu1 %v1827_v1 }
  0x12   :  { %1591 = vmatmul.mubr.msk.bf16.gmra.mrb[4].mxu0 %vm151_vm0, %v1652_v7  ;;  %1599 = vmatmul.mubr.msk.bf16.gmra.mrb[4].mxu1 %vm151_vm0, %v1653_v8 }
  0x13   :  { %252 = vmatprep.mubr.bf16.mxu0 %v1827_v1  ;;  %332 = vmatprep.mubr.bf16.mxu1 %v1827_v1 }
  0x1a   :  { %1592 = vmatmul.mubr.msk.bf16.gmra.mrb[8].mxu0 %vm151_vm0, %v1654_v9  ;;  %1600 = vmatmul.mubr.msk.bf16.gmra.mrb[8].mxu1 %vm151_vm0, %v1655_v10 }
  0x1b   :  { %262 = vmatprep.mubr.bf16.mxu0 %v1827_v1  ;;  %342 = vmatprep.mubr.bf16.mxu1 %v1827_v1 }
  0x22   :  { %1593 = vmatmul.mubr.msk.bf16.gmra.mrb[12].mxu0 %vm151_vm0, %v1656_v11  ;;  %1601 = vmatmul.mubr.msk.bf16.gmra.mrb[12].mxu1 %vm151_vm0, %v1657_v12 }
  0x23   :  { %272 = vmatprep.mubr.bf16.mxu0 %v1827_v1  ;;  %352 = vmatprep.mubr.bf16.mxu1 %v1827_v1 }
  0x2a   :  { %1594 = vmatmul.mubr.msk.bf16.gmra.mrb[16].mxu0 %vm151_vm0, %v1658_v13  ;;  %1602 = vmatmul.mubr.msk.bf16.gmra.mrb[16].mxu1 %vm151_vm0, %v1659_v14 }
  0x2b   :  { %282 = vmatprep.mubr.bf16.mxu0 %v1827_v1  ;;  %362 = vmatprep.mubr.bf16.mxu1 %v1827_v1 }
  0x32   :  { %1595 = vmatmul.mubr.msk.bf16.gmra.mrb[20].mxu0 %vm151_vm0, %v1660_v15  ;;  %1603 = vmatmul.mubr.msk.bf16.gmra.mrb[20].mxu1 %vm151_vm0, %v1661_v16 }
  0x33   :  { %292 = vmatprep.mubr.bf16.mxu0 %v1827_v1  ;;  %372 = vmatprep.mubr.bf16.mxu1 %v1827_v1 }
  0x3a   :  { %1596 = vmatmul.mubr.msk.bf16.gmra.mrb[24].mxu0 %vm151_vm0, %v1662_v17  ;;  %1604 = vmatmul.mubr.msk.bf16.gmra.mrb[24].mxu1 %vm151_vm0, %v1663_v18 }
  0x3b   :  { %302 = vmatprep.mubr.bf16.mxu0 %v1827_v1  ;;  %382 = vmatprep.mubr.bf16.mxu1 %v1827_v1 }
  0x42   :  { %1597 = vmatmul.mubr.msk.bf16.gmra.mrb[28].mxu0 %vm151_vm0, %v1664_v19  ;;  %1605 = vmatmul.mubr.msk.bf16.gmra.mrb[28].mxu1 %vm151_vm0, %v1665_v20 }
  0xdd   :  { %v1925_v24 = vpop.f32.mrb[0].mxu0  ;;  %v1927_v25 = vpop.f32.mrb[0].mxu1 }
  0xde   :  { %v1929_v26 = vpop.f32.mrb[1].mxu0  ;;  %v1931_v27 = vpop.f32.mrb[1].mxu1  ;;  %v466_v30 = vmul.f32 %v1925_v24, %v1925_v24  ;;  %v482_v31 = vmul.f32 %v1927_v25, %v1927_v25 }
  0xdf   :  { %v922_v32 = vmul.f32 %v1929_v26, %v1929_v26  ;;  %v938_v33 = vmul.f32 %v1931_v27, %v1931_v27  ;;  %v1941_v34 = vpop.f32.mrb[2].mxu0  ;;  %v1943_v35 = vpop.f32.mrb[2].mxu1 }
  0xe0   :  { %v394_v36 = vadd.f32 %v1941_v34, %v1925_v24  ;;  %v467_v37 = vmul.f32 %v1941_v34, %v1941_v34  ;;  %v430_v38 = vadd.f32 %v1943_v35, %v1927_v25  ;;  %v483_v39 = vmul.f32 %v1943_v35, %v1943_v35  ;;  %v1953_v40 = vpop.f32.mrb[3].mxu0  ;;  %v1955_v41 = vpop.f32.mrb[3].mxu1 }
  0xe1   :  { %v850_v42 = vadd.f32 %v1953_v40, %v1929_v26  ;;  %v923_v43 = vmul.f32 %v1953_v40, %v1953_v40  ;;  %v886_v44 = vadd.f32 %v1955_v41, %v1931_v27  ;;  %v939_v45 = vmul.f32 %v1955_v41, %v1955_v41 }
  0xe2   :  { %v498_v46 = vadd.f32 %v467_v37, %v466_v30  ;;  %v534_v47 = vadd.f32 %v483_v39, %v482_v31 }
  0xe3   :  { %v954_v49 = vadd.f32 %v923_v43, %v922_v32  ;;  %v990_v50 = vadd.f32 %v939_v45, %v938_v33 }
  0xe5   :  { %v1970_v51 = vpop.f32.mrb[4].mxu0  ;;  %v1972_v52 = vpop.f32.mrb[4].mxu1 }
  0xe6   :  { %v395_v57 = vadd.f32 %v394_v36, %v1970_v51  ;;  %v468_v58 = vmul.f32 %v1970_v51, %v1970_v51  ;;  %v431_v59 = vadd.f32 %v430_v38, %v1972_v52  ;;  %v484_v60 = vmul.f32 %v1972_v52, %v1972_v52  ;;  %v1989_v61 = vpop.f32.mrb[5].mxu0  ;;  %v1991_v62 = vpop.f32.mrb[5].mxu1 }
  0xe7   :  { %v851_v63 = vadd.f32 %v850_v42, %v1989_v61  ;;  %v924_v0 = vmul.f32 %v1989_v61, %v1989_v61  ;;  %v887_v1 = vadd.f32 %v886_v44, %v1991_v62  ;;  %v940_v2 = vmul.f32 %v1991_v62, %v1991_v62  ;;  %v1999_v3 = vpop.f32.mrb[6].mxu0  ;;  %v2001_v4 = vpop.f32.mrb[6].mxu1 }
  0xe8   :  { %v499_v5 = vadd.f32 %v498_v46, %v468_v58  ;;  %v535_v6 = vadd.f32 %v534_v47, %v484_v60  ;;  %v396_v7 = vadd.f32 %v395_v57, %v1999_v3  ;;  %v469_v8 = vmul.f32 %v1999_v3, %v1999_v3  ;;  %v2006_v9 = vpop.f32.mrb[7].mxu0  ;;  %v2008_v10 = vpop.f32.mrb[7].mxu1 }
  0xe9   :  { %v955_v11 = vadd.f32 %v954_v49, %v924_v0  ;;  %v991_v12 = vadd.f32 %v990_v50, %v940_v2  ;;  %v432_v13 = vadd.f32 %v431_v59, %v2001_v4  ;;  %v485_v14 = vmul.f32 %v2001_v4, %v2001_v4 }
  0xea   :  { %v397_v15 = vrot.slane %v396_v7, 4  ;;  %v500_v16 = vadd.f32 %v499_v5, %v469_v8  ;;  %v852_v17 = vadd.f32 %v851_v63, %v2006_v9  ;;  %v925_v18 = vmul.f32 %v2006_v9, %v2006_v9 }
  0xeb   :  { %v433_v19 = vrot.slane %v432_v13, 4  ;;  %v536_v20 = vadd.f32 %v535_v6, %v485_v14  ;;  %v888_v21 = vadd.f32 %v887_v1, %v2008_v10  ;;  %v941_v22 = vmul.f32 %v2008_v10, %v2008_v10 }
  0xec   :  { %v398_v23 = vadd.f32 %v397_v15, %v396_v7  ;;  %v501_v28 = vrot.slane %v500_v16, 4  ;;  %v853_v29 = vrot.slane %v852_v17, 4  ;;  %v956_v30 = vadd.f32 %v955_v11, %v925_v18 }
  0xed   :  { %v434_v31 = vadd.f32 %v433_v19, %v432_v13  ;;  %v537_v32 = vrot.slane %v536_v20, 4  ;;  %v889_v33 = vrot.slane %v888_v21, 4  ;;  %v992_v36 = vadd.f32 %v991_v12, %v941_v22  ;;  %v2019_v37 = vpop.f32.mrb[8].mxu0  ;;  %v2021_v38 = vpop.f32.mrb[8].mxu1 }
  0xee   :  { %2843 = vst [vmem:[#allocation3_spill] sm:$0xff] %v2021_v38  ;;  %v399_v39 = vrot.slane %v398_v23, 2  ;;  %v502_v42 = vadd.f32 %v501_v28, %v500_v16  ;;  %v854_v43 = vadd.f32 %v853_v29, %v852_v17  ;;  %v957_v44 = vrot.slane %v956_v30, 4  ;;  %v2023_v45 = vpop.f32.mrb[9].mxu0  ;;  %v2025_v46 = vpop.f32.mrb[9].mxu1 }
  0xef   :  { %2844 = vst [vmem:[#allocation4_spill] sm:$0xff] %v2023_v45  ;;  %2845 = vst [vmem:[#allocation5_spill] sm:$0xff] %v2025_v46  ;;  %v435_v47 = vrot.slane %v434_v31, 2  ;;  %v538_v49 = vadd.f32 %v537_v32, %v536_v20  ;;  %v890_v50 = vadd.f32 %v889_v33, %v888_v21  ;;  %v993_v57 = vrot.slane %v992_v36, 4  ;;  %v2027_v58 = vpop.f32.mrb[10].mxu0  ;;  %v2029_v59 = vpop.f32.mrb[10].mxu1 }
  0xf0   :  { %2846 = vst [vmem:[#allocation6_spill] sm:$0xff] %v2029_v59  ;;  %v400_v60 = vadd.f32 %v399_v39, %v398_v23  ;;  %v503_v63 = vrot.slane %v502_v42, 2  ;;  %v855_v0 = vrot.slane %v854_v43, 2  ;;  %v958_v1 = vadd.f32 %v957_v44, %v956_v30  ;;  %v2031_v2 = vpop.f32.mrb[11].mxu0  ;;  %v2033_v5 = vpop.f32.mrb[11].mxu1 }
  0xf1   :  { %2847 = vst [vmem:[#allocation7_spill] sm:$0xff] %v2031_v2  ;;  %2848 = vst [vmem:[#allocation8_spill] sm:$0xff] %v2033_v5  ;;  %v436_v6 = vadd.f32 %v435_v47, %v434_v31  ;;  %v539_v7 = vrot.slane %v538_v49, 2  ;;  %v891_v8 = vrot.slane %v890_v50, 2  ;;  %v994_v11 = vadd.f32 %v993_v57, %v992_v36 }
  0xf2   :  { %v401_v12 = vrot.slane %v400_v60, 1  ;;  %v504_v13 = vadd.f32 %v503_v63, %v502_v42  ;;  %v856_v14 = vadd.f32 %v855_v0, %v854_v43  ;;  %v959_v15 = vrot.slane %v958_v1, 2 }
  0xf3   :  { %v437_v16 = vrot.slane %v436_v6, 1  ;;  %v540_v17 = vadd.f32 %v539_v7, %v538_v49  ;;  %v892_v18 = vadd.f32 %v891_v8, %v890_v50  ;;  %v995_v19 = vrot.slane %v994_v11, 2 }
  0xf4   :  { %v402_v20 = vadd.f32 %v401_v12, %v400_v60  ;;  %v505_v21 = vrot.slane %v504_v13, 1  ;;  %v857_v22 = vrot.slane %v856_v14, 1  ;;  %v960_v23 = vadd.f32 %v959_v15, %v958_v1 }
  0xf5   :  { %v438_v28 = vadd.f32 %v437_v16, %v436_v6  ;;  %v541_v29 = vrot.slane %v540_v17, 1  ;;  %v893_v30 = vrot.slane %v892_v18, 1  ;;  %v996_v32 = vadd.f32 %v995_v19, %v994_v11  ;;  %v2035_v31 = vpop.f32.mrb[12].mxu0  ;;  %v2037_v33 = vpop.f32.mrb[12].mxu1 }
  0xf6   :  { %2849 = vst [vmem:[#allocation9_spill] sm:$0xff] %v2037_v33  ;;  %v506_v36 = vadd.f32 %v505_v21, %v504_v13  ;;  %v2039_v39 = vmul.f32 0.03125, %v402_v20  ;;  %v858_v42 = vadd.f32 %v857_v22, %v856_v14  ;;  %v961_v43 = vrot.slane %v960_v23, 1  ;;  %v2041_v44 = vpop.f32.mrb[13].mxu0  ;;  %v2043_v47 = vpop.f32.mrb[13].mxu1 }
  0xf7   :  { %2850 = vst [vmem:[#allocation10_spill] sm:$0xff] %v2041_v44  ;;  %2851 = vst [vmem:[#allocation11_spill] sm:$0xff] %v2043_v47  ;;  %v542_v49 = vadd.f32 %v541_v29, %v540_v17  ;;  %v2045_v50 = vmul.f32 0.03125, %v438_v28  ;;  %v894_v57 = vadd.f32 %v893_v30, %v892_v18  ;;  %v997_v60 = vrot.slane %v996_v32, 1  ;;  %v2047_v63 = vpop.f32.mrb[14].mxu0  ;;  %v2049_v0 = vpop.f32.mrb[14].mxu1 }
  0xf8   :  { %2852 = vst [vmem:[#allocation12_spill] sm:$0xff] %v2049_v0  ;;  %v578_v1 = vmul.f32 0.03125, %v506_v36  ;;  %v586_v6 = vmul.f32 %v2039_v39, %v2039_v39  ;;  %v962_v7 = vadd.f32 %v961_v43, %v960_v23  ;;  %v2053_v8 = vmul.f32 0.03125, %v858_v42  ;;  %v2055_v11 = vpop.f32.mrb[15].mxu0  ;;  %v2057_v12 = vpop.f32.mrb[15].mxu1 }
  0xf9   :  { %2853 = vst [vmem:[#allocation13_spill] sm:$0xff] %v2055_v11  ;;  %2854 = vst [vmem:[#allocation14_spill] sm:$0xff] %v2057_v12  ;;  %v582_v13 = vmul.f32 0.03125, %v542_v49  ;;  %v590_v14 = vmul.f32 %v2045_v50, %v2045_v50  ;;  %v998_v15 = vadd.f32 %v997_v60, %v996_v32  ;;  %v2061_v16 = vmul.f32 0.03125, %v894_v57 }
  0xfa   :  { %v594_v17 = vsub.f32 %v578_v1, %v586_v6  ;;  %v1034_v18 = vmul.f32 0.03125, %v962_v7  ;;  %v1042_v19 = vmul.f32 %v2053_v8, %v2053_v8  ;;  %v470_v20 = vmul.f32 %v2019_v37, %v2019_v37 }
  0xfb   :  { %v598_v21 = vsub.f32 %v582_v13, %v590_v14  ;;  %v1038_v22 = vmul.f32 0.03125, %v998_v15  ;;  %v1046_v23 = vmul.f32 %v2061_v16, %v2061_v16  ;;  %v486_v28 = vmul.f32 %v2021_v38, %v2021_v38 }
  0xfc   :  { %v602_v29 = vadd.f32 1e-05, %v594_v17  ;;  %v1050_v30 = vsub.f32 %v1034_v18, %v1042_v19  ;;  %v926_v32 = vmul.f32 %v2023_v45, %v2023_v45  ;;  %v942_v36 = vmul.f32 %v2025_v46, %v2025_v46 }
  0xfd   :  { %v606_v42 = vadd.f32 1e-05, %v598_v21  ;;  %v1054_v43 = vsub.f32 %v1038_v22, %v1046_v23  ;;  %v403_v49 = vadd.f32 %v2027_v58, %v2019_v37  ;;  %v471_v57 = vmul.f32 %v2027_v58, %v2027_v58  ;;  %v2079_v60 = vpop.f32.mrb[16].mxu0  ;;  %v2081_v1 = vpop.f32.mrb[16].mxu1 }
  0xfe   :  { %1666 = vrsqrt.f32 %v602_v29  ;;  %v1058_v6 = vadd.f32 1e-05, %v1050_v30  ;;  %v439_v7 = vadd.f32 %v2029_v59, %v2021_v38  ;;  %v487_v13 = vmul.f32 %v2029_v59, %v2029_v59  ;;  %v2087_v14 = vpop.f32.mrb[17].mxu0  ;;  %v2089_v15 = vpop.f32.mrb[17].mxu1 }
  0xff   :  { %2855 = vst [vmem:[#allocation15_spill] sm:$0xff] %v2089_v15  ;;  %1668 = vrsqrt.f32 %v606_v42  ;;  %v1062_v17 = vadd.f32 1e-05, %v1054_v43  ;;  %v507_v18 = vadd.f32 %v471_v57, %v470_v20  ;;  %v859_v19 = vadd.f32 %v2031_v2, %v2023_v45  ;;  %v2093_v21 = vpop.f32.mrb[18].mxu0  ;;  %v2095_v22 = vpop.f32.mrb[18].mxu1 }
 0x100   :  { %1670 = vrsqrt.f32 %v1058_v6  ;;  %v543_v23 = vadd.f32 %v487_v13, %v486_v28  ;;  %v927_v29 = vmul.f32 %v2031_v2, %v2031_v2  ;;  %v895_v30 = vadd.f32 %v2033_v5, %v2025_v46  ;;  %v2101_v59 = vpop.f32.mrb[19].mxu0  ;;  %v2103_v42 = vpop.f32.mrb[19].mxu1 }
 0x101   :  { %2856 = vst [vmem:[#allocation16_spill] sm:$0xff] %v2103_v42  ;;  %1672 = vrsqrt.f32 %v1062_v17  ;;  %v943_v20 = vmul.f32 %v2033_v5, %v2033_v5  ;;  %v404_v43 = vadd.f32 %v403_v49, %v2035_v31  ;;  %v472_v57 = vmul.f32 %v2035_v31, %v2035_v31 }
 0x102   :  { %v963_v28 = vadd.f32 %v927_v29, %v926_v32  ;;  %v440_v6 = vadd.f32 %v439_v7, %v2037_v33  ;;  %v488_v13 = vmul.f32 %v2037_v33, %v2037_v33  ;;  %v860_v46 = vadd.f32 %v859_v19, %v2041_v44 }
 0x103   :  { %v999_v2 = vadd.f32 %v943_v20, %v942_v36  ;;  %v508_v45 = vadd.f32 %v507_v18, %v472_v57  ;;  %v928_v17 = vmul.f32 %v2041_v44, %v2041_v44  ;;  %v896_v5 = vadd.f32 %v895_v30, %v2043_v47 }
 0x104   :  { %v544_v38 = vadd.f32 %v543_v23, %v488_v13  ;;  %v944_v49 = vmul.f32 %v2043_v47, %v2043_v47  ;;  %v405_v32 = vadd.f32 %v404_v43, %v2047_v63  ;;  %v473_v7 = vmul.f32 %v2047_v63, %v2047_v63 }
 0x105   :  { %v964_v29 = vadd.f32 %v963_v28, %v928_v17  ;;  %v441_v33 = vadd.f32 %v440_v6, %v2049_v0  ;;  %v489_v36 = vmul.f32 %v2049_v0, %v2049_v0  ;;  %v861_v18 = vadd.f32 %v860_v46, %v2055_v11  ;;  %v2126_v19 = vpop.f32.mrb[20].mxu0  ;;  %v2128_v30 = vpop.f32.mrb[20].mxu1 }
 0x106   :  { %2857 = vst [vmem:[#allocation17_spill] sm:$0xff] %v2128_v30  ;;  %v2130_v23 = vadd.f32 %v999_v2, %v944_v49  ;;  %v406_v20 = vrot.slane %v405_v32, 4  ;;  %v509_v57 = vadd.f32 %v508_v45, %v473_v7  ;;  %v929_v43 = vmul.f32 %v2055_v11, %v2055_v11  ;;  %v2134_v13 = vpop.f32.mrb[21].mxu0  ;;  %v2136_v28 = vpop.f32.mrb[21].mxu1 }
 0x107   :  { %2858 = vst [vmem:[#allocation18_spill] sm:$0xff] %v2134_v13  ;;  %2859 = vst [vmem:[#allocation19_spill] sm:$0xff] %v2136_v28  ;;  %v442_v6 = vrot.slane %v441_v33, 4  ;;  %v2138_v17 = vadd.f32 %v544_v38, %v489_v36  ;;  %v862_v47 = vrot.slane %v861_v18, 4  ;;  %v2141_v46 = vadd.f32 %v896_v5, %v2057_v12  ;;  %v2143_v44 = vpop.f32.mrb[22].mxu0  ;;  %v2145_v2 = vpop.f32.mrb[22].mxu1 }
 0x108   :  { %2860 = vst [vmem:[#allocation20_spill] sm:$0xff] %v2143_v44  ;;  %2861 = vst [vmem:[#allocation21_spill] sm:$0xff] %v2145_v2  ;;  %v1667_v49 = vpop.eup %1666  ;;  %v407_v45 = vadd.f32 %v406_v20, %v405_v32  ;;  %v510_v7 = vrot.slane %v509_v57, 4  ;;  %v2147_v30 = vadd.f32 %v964_v29, %v929_v43  ;;  %v2151_v11 = vmul.f32 %v2057_v12, %v2057_v12  ;;  %v2153_v28 = vpop.f32.mrb[23].mxu0 }
 0x109   :  { %2862 = vst [vmem:[#allocation22_spill] sm:$0xff] %v2153_v28  ;;  %v2155_v38 = vpop.f32.mrb[23].mxu1  ;;  %v1669_v36 = vpop.eup %1668  ;;  %v618_v5 = vmul.f32 %v1667_v49, %v1968_v48  ;;  %v2158_v13 = vadd.f32 %v442_v6, %v441_v33  ;;  %v2161_v44 = vadd.f32 %v862_v47, %v861_v18 }
 0x10a   :  { %2863 = vst [vmem:[#allocation23_spill] sm:$0xff] %v2155_v38  ;;  %v1671_v32 = vpop.eup %1670  ;;  %v622_v29 = vmul.f32 %v1669_v36, %v1968_v48  ;;  %v408_v20 = vrot.slane %v407_v45, 2  ;;  %v2164_v43 = vadd.f32 %v510_v7, %v509_v57 }
 0x10b   :  { %v1673_v28 = vpop.eup %1672  ;;  %v626_v38 = vmul.f32 %v618_v5, %v2039_v39  ;;  %v725_v0 = vrot.slane %v618_v5, %v1976_v54  ;;  %v1077_v33 = vmul.f32 %v1671_v32, %v1981_v56 }
 0x10c   :  { %v630_v47 = vmul.f32 %v622_v29, %v2045_v50  ;;  %v741_v18 = vrot.slane %v622_v29, %v1976_v54  ;;  %v1081_v49 = vmul.f32 %v1673_v28, %v1981_v56  ;;  %v409_v36 = vadd.f32 %v408_v20, %v407_v45 }
 0x10d   :  { %v648_v57 = vrot.slane %v626_v38, %v1974_v53  ;;  %v754_v7 = vmul.f32 %v725_v0, %v1925_v24  ;;  %v755_v12 = vmul.f32 %v725_v0, %v1941_v34  ;;  %v756_v39 = vmul.f32 %v725_v0, %v1970_v51  ;;  %v2178_v5 = vpop.f32.mrb[24].mxu0  ;;  %v2180_v32 = vpop.f32.mrb[24].mxu1 }
 0x10e   :  { %2864 = vst [vmem:[#allocation24_spill] sm:$0xff] %v2178_v5  ;;  %2865 = vst [vmem:[#allocation25_spill] sm:$0xff] %v2180_v32  ;;  %v757_v2 = vmul.f32 %v725_v0, %v1999_v3  ;;  %v676_v50 = vrot.slane %v630_v47, %v1974_v53  ;;  %v770_v29 = vmul.f32 %v741_v18, %v1927_v25  ;;  %v2186_v45 = vpop.f32.mrb[25].mxu0  ;;  %v2188_v38 = vpop.f32.mrb[25].mxu1 }
 0x10f   :  { %v771_v28 = vmul.f32 %v741_v18, %v1943_v35  ;;  %2866 = vst [vmem:[#allocation26_spill] sm:$0xff] %v2186_v45  ;;  %2867 = vst [vmem:[#allocation27_spill] sm:$0xff] %v2188_v38  ;;  %v698_v24 = vrot.slane %v648_v57, 7  ;;  %v772_v34 = vmul.f32 %v741_v18, %v1972_v52  ;;  %v773_v51 = vmul.f32 %v741_v18, %v2001_v4  ;;  %v2193_v6 = vpop.f32.mrb[26].mxu0  ;;  %v2195_v3 = vpop.f32.mrb[26].mxu1 }
 0x110   :  { %v1085_v20 = vmul.f32 %v1077_v33, %v2053_v8  ;;  %2868 = vst [vmem:[#allocation28_spill] sm:$0xff] %v2193_v6  ;;  %2869 = vst [vmem:[#allocation29_spill] sm:$0xff] %v2195_v3  ;;  %v702_v0 = vrot.slane %v676_v50, 7  ;;  %v1184_v25 = vrot.slane %v1077_v33, %v1976_v54  ;;  %v1089_v35 = vmul.f32 %v1081_v49, %v2061_v16  ;;  %v2200_v45 = vpop.f32.mrb[27].mxu0  ;;  %v2202_v57 = vpop.f32.mrb[27].mxu1 }
 0x111   :  { %v1200_v47 = vrot.slane %v1081_v49, %v1976_v54  ;;  %2870 = vst [vmem:[#allocation30_spill] sm:$0xff] %v2200_v45  ;;  %2871 = vst [vmem:[#allocation31_spill] sm:$0xff] %v2202_v57  ;;  %v714_v52 = vsub.f32 %v1968_v48, %v698_v24  ;;  %v410_v8 = vrot.slane %v409_v36, 1  ;;  %v512_v18 = vrot.slane %v2164_v43, 2 }
 0x112   :  { %v1107_v4 = vrot.slane %v1085_v20, %v1974_v53  ;;  %v718_v3 = vsub.f32 %v1968_v48, %v702_v0  ;;  %v1213_v50 = vmul.f32 %v1184_v25, %v1929_v26  ;;  %v1214_v33 = vmul.f32 %v1184_v25, %v1953_v40 }
 0x113   :  { %v1215_v16 = vmul.f32 %v1184_v25, %v1989_v61  ;;  %v789_v49 = vrot.slane %v714_v52, %v1978_v55  ;;  %v1216_v57 = vmul.f32 %v1184_v25, %v2006_v9  ;;  %v1135_v24 = vrot.slane %v1089_v35, %v1974_v53 }
 0x114   :  { %v1157_v45 = vrot.slane %v1107_v4, 7  ;;  %v805_v20 = vrot.slane %v718_v3, %v1978_v55  ;;  %v1229_v6 = vmul.f32 %v1200_v47, %v1931_v27  ;;  %v1230_v38 = vmul.f32 %v1200_v47, %v1955_v41 }
 0x115   :  { %v1231_v0 = vmul.f32 %v1200_v47, %v1991_v62  ;;  %v2218_v26 = vadd.f32 %v789_v49, %v754_v7  ;;  %v2220_v40 = vadd.f32 %v789_v49, %v755_v12  ;;  %v2222_v61 = vadd.f32 %v789_v49, %v756_v39  ;;  %v2226_v4 = vpop.f32.mrb[28].mxu0  ;;  %v2228_v9 = vpop.f32.mrb[28].mxu1 }
 0x116   :  { %v2224_v52 = vadd.f32 %v789_v49, %v757_v2  ;;  %2872 = vst [vmem:[#allocation32_spill] sm:$0xff] %v2226_v4  ;;  %2873 = vst [vmem:[#allocation33_spill] sm:$0xff] %v2228_v9  ;;  %v2230_v25 = vadd.f32 %v805_v20, %v770_v29  ;;  %v2232_v3 = vadd.f32 %v805_v20, %v771_v28  ;;  %v2238_v62 = vpop.f32.mrb[29].mxu0  ;;  %v2240_v12 = vpop.f32.mrb[29].mxu1  ;;  %v1161_v2 = vrot.slane %v1135_v24, 7 }
 0x117   :  { %v2234_v27 = vadd.f32 %v805_v20, %v772_v34  ;;  %v2236_v41 = vadd.f32 %v805_v20, %v773_v51  ;;  %2875 = vst [vmem:[#allocation35_spill] sm:$0xff] %v2238_v62  ;;  %2876 = vst [vmem:[#allocation36_spill] sm:$0xff] %v2240_v12  ;;  %v1173_v7 = vsub.f32 %v1981_v56, %v1157_v45  ;;  %v2244_v49 = vpop.f32.mrb[30].mxu0  ;;  %v2246_v29 = vpop.f32.mrb[30].mxu1  ;;  %v2879_v34 = vrot.slane %v2158_v13, 2 }
 0x118   :  { %v1232_v39 = vmul.f32 %v1200_v47, %v2008_v10  ;;  %v411_v35 = vadd.f32 %v410_v8, %v409_v36  ;;  %2877 = vst [vmem:[#allocation37_spill] sm:$0xff] %v2244_v49  ;;  %2878 = vst [vmem:[#allocation38_spill] sm:$0xff] %v2246_v29  ;;  %v513_v28 = vadd.f32 %v512_v18, %v2164_v43  ;;  %v2880_v20 = vrot.slane %v2138_v17, 4  ;;  %v2256_v24 = vpop.f32.mrb[31].mxu0  ;;  %v2258_v10 = vpop.f32.mrb[31].mxu1 }
 0x119   :  { %2874 = vst [vmem:[#allocation34_spill] sm:$0xff] %v2236_v41  ;;  %v445_v51 = vadd.f32 %v2879_v34, %v2158_v13  ;;  %v864_v45 = vrot.slane %v2161_v44, 2  ;;  %2881 = vst [vmem:[#allocation39_spill] sm:$0xff] %v2256_v24  ;;  %v1248_v36 = vrot.slane %v1173_v7, %v1978_v55  ;;  %v1177_v47 = vsub.f32 %v1981_v56, %v1161_v2 }
 0x11a   :  { %v547_v12 = vadd.f32 %v2880_v20, %v2138_v17  ;;  %2882 = vst [vmem:[#allocation40_spill] sm:$0xff] %v2258_v10  ;;  %v2262_v8 = vmul.f32 0.03125, %v411_v35  ;;  %v2883_v43 = vrot.slane %v2147_v30, 4  ;;  %v514_v18 = vrot.slane %v513_v28, 1 }
 0x11b   :  { %v446_v34 = vrot.slane %v445_v51, 1  ;;  %v865_v17 = vadd.f32 %v864_v45, %v2161_v44  ;;  %v1277_v20 = vadd.f32 %v1248_v36, %v1213_v50  ;;  %v1278_v49 = vadd.f32 %v1248_v36, %v1214_v33 }
 0x11c   :  { %v967_v13 = vadd.f32 %v2883_v43, %v2147_v30  ;;  %v548_v29 = vrot.slane %v547_v12, 2  ;;  %v1279_v24 = vadd.f32 %v1248_v36, %v1215_v16  ;;  %v1280_v62 = vadd.f32 %v1248_v36, %v1216_v57 }
 0x11d   :  { %v1264_v10 = vrot.slane %v1177_v47, %v1978_v55  ;;  %v515_v7 = vadd.f32 %v514_v18, %v513_v28  ;;  %v587_v2 = vmul.f32 %v2262_v8, %v2262_v8  ;;  %v447_v35 = vadd.f32 %v446_v34, %v445_v51 }
 0x11e   :  { %v1606_v9 = vmul.f32 -1.442695, %v1277_v20  ;;  %v1607_v4 = vmul.f32 -1.442695, %v1278_v49  ;;  %v1608_v32 = vmul.f32 -1.442695, %v1279_v24  ;;  %v549_v30 = vadd.f32 %v548_v29, %v547_v12 }
 0x11f   :  { %v1609_v43 = vmul.f32 -1.442695, %v1280_v62  ;;  %v1293_v5 = vadd.f32 %v1264_v10, %v1229_v6  ;;  %v1294_v56 = vadd.f32 %v1264_v10, %v1230_v38  ;;  %v1295_v41 = vadd.f32 %v1264_v10, %v1231_v0 }
 0x120   :  { %1674 = vpow2.f32 %v1606_v9  ;;  %v1296_v44 = vadd.f32 %v1264_v10, %v1232_v39  ;;  %v579_v50 = vmul.f32 0.03125, %v515_v7  ;;  %v550_v33 = vrot.slane %v549_v30, 1 }
 0x121   :  { %1676 = vpow2.f32 %v1607_v4  ;;  %v1622_v57 = vmul.f32 -1.442695, %v1293_v5  ;;  %v1623_v16 = vmul.f32 -1.442695, %v1294_v56  ;;  %v1624_v28 = vmul.f32 -1.442695, %v1295_v41 }
 0x122   :  { %1678 = vpow2.f32 %v1608_v32  ;;  %v1625_v45 = vmul.f32 -1.442695, %v1296_v44  ;;  %v595_v36 = vsub.f32 %v579_v50, %v587_v2  ;;  %v551_v51 = vadd.f32 %v550_v33, %v549_v30 }
 0x123   :  { %1680 = vpow2.f32 %v1609_v43  ;;  %v2271_v49 = vmul.f32 0.03125, %v447_v35  ;;  %v866_v12 = vrot.slane %v865_v17, 1  ;;  %v968_v62 = vrot.slane %v967_v13, 2 }
 0x124   :  { %1682 = vpow2.f32 %v1622_v57  ;;  %v603_v6 = vadd.f32 1e-05, %v595_v36  ;;  %v583_v38 = vmul.f32 0.03125, %v551_v51  ;;  %v898_v0 = vrot.slane %v2141_v46, 4 }
 0x125   :  { %1684 = vpow2.f32 %v1623_v16  ;;  %v591_v5 = vmul.f32 %v2271_v49, %v2271_v49  ;;  %v867_v56 = vadd.f32 %v866_v12, %v865_v17  ;;  %v969_v4 = vadd.f32 %v968_v62, %v967_v13 }
 0x126   :  { %1686 = vpow2.f32 %v1624_v28  ;;  %v899_v32 = vadd.f32 %v898_v0, %v2141_v46  ;;  %v1001_v9 = vadd.f32 %v2130_v23, %v2151_v11  ;;  %v474_v41 = vmul.f32 %v2079_v60, %v2079_v60 }
 0x127   :  { %1688 = vpow2.f32 %v1625_v45  ;;  %v599_v39 = vsub.f32 %v583_v38, %v591_v5  ;;  %v970_v29 = vrot.slane %v969_v4, 1  ;;  %v2281_v24 = vmul.f32 0.03125, %v867_v56 }
 0x128   :  { %1690 = vrsqrt.f32 %v603_v6  ;;  %v900_v10 = vrot.slane %v899_v32, 2  ;;  %v1002_v47 = vrot.slane %v1001_v9, 4  ;;  %v490_v13 = vmul.f32 %v2081_v1, %v2081_v1 }
 0x129   :  { %v607_v18 = vadd.f32 1e-05, %v599_v39  ;;  %v971_v34 = vadd.f32 %v970_v29, %v969_v4  ;;  %v1043_v46 = vmul.f32 %v2281_v24, %v2281_v24  ;;  %v930_v11 = vmul.f32 %v2087_v14, %v2087_v14 }
 0x12a   :  { %v1675_v23 = vpop.eup %1674  ;;  %v901_v17 = vadd.f32 %v900_v10, %v899_v32  ;;  %v1003_v20 = vadd.f32 %v1002_v47, %v1001_v9  ;;  %v946_v7 = vmul.f32 %v2089_v15, %v2089_v15  ;;  %v412_v2 = vadd.f32 %v2093_v21, %v2079_v60 }
 0x12b   :  { %v1677_v35 = vpop.eup %1676  ;;  %v1405_v30 = vadd.f32 1.0, %v1675_v23  ;;  %1692 = vrsqrt.f32 %v607_v18  ;;  %v1035_v43 = vmul.f32 0.03125, %v971_v34  ;;  %v475_v44 = vmul.f32 %v2093_v21, %v2093_v21 }
 0x12c   :  { %v1679_v50 = vpop.eup %1678  ;;  %v1406_v33 = vadd.f32 1.0, %v1677_v35  ;;  %v902_v57 = vrot.slane %v901_v17, 1  ;;  %v1004_v16 = vrot.slane %v1003_v20, 2  ;;  %v2297_v28 = vadd.f32 %v2095_v22, %v2081_v1 }
 0x12d   :  { %v1681_v45 = vpop.eup %1680  ;;  %v1407_v36 = vadd.f32 1.0, %v1679_v50  ;;  %1694 = vrcp.f32 %v1405_v30  ;;  %v1051_v51 = vsub.f32 %v1035_v43, %v1043_v46  ;;  %v516_v12 = vadd.f32 %v475_v44, %v474_v41 }
 0x12e   :  { %v1683_v62 = vpop.eup %1682  ;;  %v1408_v6 = vadd.f32 1.0, %v1681_v45  ;;  %1696 = vrcp.f32 %v1406_v33  ;;  %v903_v38 = vadd.f32 %v902_v57, %v901_v17  ;;  %v1005_v0 = vadd.f32 %v1004_v16, %v1003_v20 }
 0x12f   :  { %v1685_v5 = vpop.eup %1684  ;;  %1698 = vrcp.f32 %v1407_v36  ;;  %v1421_v56 = vadd.f32 1.0, %v1683_v62  ;;  %v1059_v4 = vadd.f32 1e-05, %v1051_v51  ;;  %v491_v32 = vmul.f32 %v2095_v22, %v2095_v22 }
 0x130   :  { %v1687_v9 = vpop.eup %1686  ;;  %1700 = vrcp.f32 %v1408_v6  ;;  %v1422_v39 = vadd.f32 1.0, %v1685_v5  ;;  %v1006_v29 = vrot.slane %v1005_v0, 1  ;;  %v2301_v10 = vmul.f32 0.03125, %v903_v38 }
 0x131   :  { %v1689_v41 = vpop.eup %1688  ;;  %v1423_v47 = vadd.f32 1.0, %v1687_v9  ;;  %1702 = vrcp.f32 %v1421_v56  ;;  %v2303_v18 = vadd.f32 %v491_v32, %v490_v13  ;;  %v868_v34 = vadd.f32 %v2101_v59, %v2087_v14 }
 0x132   :  { %v1691_v46 = vpop.eup %1690  ;;  %v1424_v23 = vadd.f32 1.0, %v1689_v41  ;;  %1704 = vrcp.f32 %v1422_v39  ;;  %v1007_v17 = vadd.f32 %v1006_v29, %v1005_v0  ;;  %v1047_v20 = vmul.f32 %v2301_v10, %v2301_v10 }
 0x133   :  { %1706 = vrcp.f32 %v1423_v47  ;;  %v619_v35 = vmul.f32 %v1691_v46, %v1968_v48  ;;  %v931_v30 = vmul.f32 %v2101_v59, %v2101_v59  ;;  %v904_v13 = vadd.f32 %v2103_v42, %v2089_v15 }
 0x134   :  { %1708 = vrcp.f32 %v1424_v23  ;;  %v1039_v43 = vmul.f32 0.03125, %v1007_v17  ;;  %v947_v44 = vmul.f32 %v2103_v42, %v2103_v42  ;;  %v2317_v50 = vadd.f32 %v412_v2, %v2126_v19 }
 0x135   :  { %v1693_v33 = vpop.eup %1692  ;;  %v627_v57 = vmul.f32 %v619_v35, %v2262_v8  ;;  %v729_v16 = vrot.slane %v619_v35, %v1976_v54  ;;  %1710 = vrsqrt.f32 %v1059_v4  ;;  %v2321_v45 = vadd.f32 %v931_v30, %v930_v11 }
 0x136   :  { %v623_v36 = vmul.f32 %v1693_v33, %v1968_v48  ;;  %v1055_v51 = vsub.f32 %v1039_v43, %v1047_v20  ;;  %v2324_v62 = vadd.f32 %v947_v44, %v946_v7  ;;  %v476_v6 = vmul.f32 %v2126_v19, %v2126_v19  ;;  %v2887_v20 = vld [vmem:[#allocation12_spill] sm:$0xff]  ;;  %v2888_v44 = vld [vmem:[#allocation17_spill] sm:$0xff] }
 0x137   :  { %v1695_v38 = vpop.eup %1694  ;;  %v655_v2 = vrot.slane %v627_v57, %v1974_v53  ;;  %v758_v0 = vmul.f32 %v729_v16, %v2019_v37  ;;  %v759_v8 = vmul.f32 %v729_v16, %v2027_v58  ;;  %v760_v5 = vmul.f32 %v729_v16, %v2035_v31 }
 0x138   :  { %v1697_v56 = vpop.eup %1696  ;;  %v1501_v11 = vmul.f32 %v1695_v38, %v2218_v26  ;;  %v761_v4 = vmul.f32 %v729_v16, %v2047_v63  ;;  %v631_v7 = vmul.f32 %v623_v36, %v2271_v49  ;;  %v745_v32 = vrot.slane %v623_v36, %v1976_v54  ;;  %v2884_v63 = vld [vmem:[#allocation3_spill] sm:$0xff]  ;;  %v2885_v49 = vld [vmem:[#allocation6_spill] sm:$0xff] }
 0x139   :  { %v1699_v9 = vpop.eup %1698  ;;  %v1502_v39 = vmul.f32 %v1697_v56, %v2220_v40  ;;  %v699_v29 = vrot.slane %v655_v2, 7  ;;  %v1063_v41 = vadd.f32 1e-05, %v1055_v51  ;;  %v517_v47 = vadd.f32 %v516_v12, %v476_v6  ;;  %v2886_v12 = vld [vmem:[#allocation9_spill] sm:$0xff]  ;;  %v2889_v6 = vld [vmem:[#allocation18_spill] sm:$0xff]  ;;  %v2890_v56 = vld [vmem:[#allocation19_spill] sm:$0xff] }
 0x13a   :  { %v1701_v37 = vpop.eup %1700  ;;  %v1503_v58 = vmul.f32 %v1699_v9, %v2222_v61  ;;  %1534 = vst.msk [vmem:[%s2793_s3] sm:$0xff] %vm1533_vm1, %v1501_v11  ;;  %v683_v31 = vrot.slane %v631_v7, %v1974_v53  ;;  %v774_v26 = vmul.f32 %v745_v32, %v2884_v63  ;;  %v775_v46 = vmul.f32 %v745_v32, %v2885_v49 }
 0x13b   :  { %v1703_v23 = vpop.eup %1702  ;;  %v1504_v40 = vmul.f32 %v1701_v37, %v2224_v52  ;;  %1535 = vst.msk [vmem:[%s2793_s3 + $0x8] sm:$0xff] %vm1533_vm1, %v1502_v39  ;;  %v715_v61 = vsub.f32 %v1968_v48, %v699_v29  ;;  %v776_v17 = vmul.f32 %v745_v32, %v2886_v12  ;;  %v777_v35 = vmul.f32 %v745_v32, %v2887_v20  ;;  %v2891_v32 = vld [vmem:[#allocation34_spill] sm:$0xff]  ;;  %v2894_v12 = vld [vmem:[#allocation21_spill] sm:$0xff] }
 0x13c   :  { %v1705_v30 = vpop.eup %1704  ;;  %1536 = vst.msk [vmem:[%s2793_s3 + $0x10] sm:$0xff] %vm1533_vm1, %v1503_v58  ;;  %v1517_v43 = vmul.f32 %v1703_v23, %v2230_v25  ;;  %v703_v52 = vrot.slane %v683_v31, 7  ;;  %1712 = vrsqrt.f32 %v1063_v41  ;;  %v449_v33 = vadd.f32 %v2297_v28, %v2888_v44  ;;  %v2892_v29 = vld [vmem:[#allocation2_spill] sm:$0xff] }
 0x13d   :  { %v1707_v57 = vpop.eup %1706  ;;  %1537 = vst.msk [vmem:[%s2793_s3 + $0x18] sm:$0xff] %vm1533_vm1, %v1504_v40  ;;  %v1518_v16 = vmul.f32 %v1705_v30, %v2232_v3  ;;  %v793_v36 = vrot.slane %v715_v61, %v1978_v55  ;;  %v492_v51 = vmul.f32 %v2888_v44, %v2888_v44  ;;  %v869_v25 = vadd.f32 %v868_v34, %v2889_v6 }
 0x13e   :  { %v1709_v38 = vpop.eup %1708  ;;  %v1519_v2 = vmul.f32 %v1707_v57, %v2234_v27  ;;  %1550 = vst.msk [vmem:[%s2793_s3 + $0x80] sm:$0xff] %vm1533_vm1, %v1517_v43  ;;  %v719_v28 = vsub.f32 %v1968_v48, %v703_v52  ;;  %v932_v3 = vmul.f32 %v2889_v6, %v2889_v6  ;;  %v2378_v11 = vadd.f32 %v904_v13, %v2890_v56  ;;  %v2897_v52 = vld [vmem:[#allocation7_spill] sm:$0xff]  ;;  %v2898_v57 = vld [vmem:[#allocation10_spill] sm:$0xff] }
 0x13f   :  { %v1711_v7 = vpop.eup %1710  ;;  %v1520_v9 = vmul.f32 %v1709_v38, %v2891_v32  ;;  %1551 = vst.msk [vmem:[%s2793_s3 + $0x88] sm:$0xff] %vm1533_vm1, %v1518_v16  ;;  %v2385_v27 = vadd.f32 %v793_v36, %v758_v0  ;;  %v2387_v34 = vadd.f32 %v793_v36, %v759_v8  ;;  %v2389_v39 = vadd.f32 %v793_v36, %v760_v5  ;;  %v2893_v5 = vld [vmem:[#allocation20_spill] sm:$0xff] }
 0x140   :  { %1552 = vst.msk [vmem:[%s2793_s3 + $0x90] sm:$0xff] %vm1533_vm1, %v1519_v2  ;;  %v2395_v48 = vadd.f32 %v793_v36, %v761_v4  ;;  %v809_v13 = vrot.slane %v719_v28, %v1978_v55  ;;  %v1078_v41 = vmul.f32 %v1711_v7, %v2892_v29  ;;  %v553_v37 = vadd.f32 %v2303_v18, %v492_v51 }
 0x141   :  { %1553 = vst.msk [vmem:[%s2793_s3 + $0x98] sm:$0xff] %vm1533_vm1, %v1520_v9  ;;  %v2405_v0 = vadd.f32 %v2321_v45, %v932_v3  ;;  %v948_v8 = vmul.f32 %v2890_v56, %v2890_v56  ;;  %v414_v4 = vadd.f32 %v2317_v50, %v2893_v5  ;;  %v477_v58 = vmul.f32 %v2893_v5, %v2893_v5 }
 0x142   :  { %v2413_v31 = vadd.f32 %v809_v13, %v774_v26  ;;  %v2415_v18 = vadd.f32 %v809_v13, %v775_v46  ;;  %v2417_v63 = vadd.f32 %v809_v13, %v776_v17  ;;  %v2419_v49 = vadd.f32 %v809_v13, %v777_v35  ;;  %v2895_v46 = vld [vmem:[#allocation22_spill] sm:$0xff]  ;;  %v2896_v35 = vld [vmem:[#allocation4_spill] sm:$0xff] }
 0x143   :  { %v1086_v45 = vmul.f32 %v1078_v41, %v2281_v24  ;;  %v1188_v23 = vrot.slane %v1078_v41, %v1976_v54  ;;  %v2424_v40 = vadd.f32 %v2324_v62, %v948_v8  ;;  %v415_v61 = vrot.slane %v414_v4, 4  ;;  %v2899_v62 = vld [vmem:[#allocation13_spill] sm:$0xff] }
 0x144   :  { %v518_v50 = vadd.f32 %v517_v47, %v477_v58  ;;  %v450_v20 = vadd.f32 %v449_v33, %v2894_v12  ;;  %v493_v26 = vmul.f32 %v2894_v12, %v2894_v12  ;;  %v870_v30 = vadd.f32 %v869_v25, %v2895_v46 }
 0x145   :  { %v1114_v17 = vrot.slane %v1086_v45, %v1974_v53  ;;  %v1217_v43 = vmul.f32 %v1188_v23, %v2896_v35  ;;  %v1218_v24 = vmul.f32 %v1188_v23, %v2897_v52  ;;  %v1219_v16 = vmul.f32 %v1188_v23, %v2898_v57  ;;  %v2901_v35 = vld [vmem:[#allocation8_spill] sm:$0xff]  ;;  %v2902_v57 = vld [vmem:[#allocation11_spill] sm:$0xff] }
 0x146   :  { %v1713_v36 = vpop.eup %1712  ;;  %v1220_v51 = vmul.f32 %v1188_v23, %v2899_v62  ;;  %v416_v38 = vadd.f32 %v415_v61, %v414_v4  ;;  %v519_v47 = vrot.slane %v518_v50, 4  ;;  %v451_v2 = vrot.slane %v450_v20, 4  ;;  %v2903_v62 = vld [vmem:[#allocation14_spill] sm:$0xff] }
 0x147   :  { %v1158_v33 = vrot.slane %v1114_v17, 7  ;;  %v1082_v28 = vmul.f32 %v1713_v36, %v2892_v29  ;;  %v554_v3 = vadd.f32 %v553_v37, %v493_v26  ;;  %v871_v7 = vrot.slane %v870_v30, 4 }
 0x148   :  { %v417_v25 = vrot.slane %v416_v38, 2  ;;  %v520_v32 = vadd.f32 %v519_v47, %v518_v50  ;;  %v452_v9 = vadd.f32 %v451_v2, %v450_v20  ;;  %v933_v13 = vmul.f32 %v2895_v46, %v2895_v46  ;;  %v2900_v50 = vld [vmem:[#allocation5_spill] sm:$0xff] }
 0x149   :  { %v1174_v41 = vsub.f32 %v2892_v29, %v1158_v33  ;;  %v1090_v8 = vmul.f32 %v1082_v28, %v2301_v10  ;;  %v1204_v58 = vrot.slane %v1082_v28, %v1976_v54  ;;  %v555_v4 = vrot.slane %v554_v3, 4 }
 0x14a   :  { %v418_v45 = vadd.f32 %v417_v25, %v416_v38  ;;  %v521_v23 = vrot.slane %v520_v32, 2  ;;  %v453_v61 = vrot.slane %v452_v9, 2  ;;  %v872_v17 = vadd.f32 %v871_v7, %v870_v30 }
 0x14b   :  { %v1252_v37 = vrot.slane %v1174_v41, %v1978_v55  ;;  %v1142_v26 = vrot.slane %v1090_v8, %v1974_v53  ;;  %v1233_v20 = vmul.f32 %v1204_v58, %v2900_v50  ;;  %v1234_v52 = vmul.f32 %v1204_v58, %v2901_v35 }
 0x14c   :  { %v1235_v36 = vmul.f32 %v1204_v58, %v2902_v57  ;;  %v1236_v47 = vmul.f32 %v1204_v58, %v2903_v62  ;;  %v419_v10 = vrot.slane %v418_v45, 1  ;;  %v522_v2 = vadd.f32 %v521_v23, %v520_v32 }
 0x14d   :  { %v1281_v33 = vadd.f32 %v1252_v37, %v1217_v43  ;;  %v1282_v28 = vadd.f32 %v1252_v37, %v1218_v24  ;;  %v1283_v38 = vadd.f32 %v1252_v37, %v1219_v16  ;;  %v1284_v25 = vadd.f32 %v1252_v37, %v1220_v51 }
 0x14e   :  { %v1162_v56 = vrot.slane %v1142_v26, 7  ;;  %v420_v30 = vadd.f32 %v419_v10, %v418_v45  ;;  %v523_v7 = vrot.slane %v522_v2, 1  ;;  %v454_v41 = vadd.f32 %v453_v61, %v452_v9 }
 0x14f   :  { %v1610_v42 = vmul.f32 -1.442695, %v1281_v33  ;;  %v1611_v8 = vmul.f32 -1.442695, %v1282_v28  ;;  %v1612_v15 = vmul.f32 -1.442695, %v1283_v38  ;;  %v556_v50 = vadd.f32 %v555_v4, %v554_v3 }
 0x150   :  { %v1613_v46 = vmul.f32 -1.442695, %v1284_v25  ;;  %v1178_v35 = vsub.f32 %v2892_v29, %v1162_v56  ;;  %v524_v57 = vadd.f32 %v523_v7, %v522_v2  ;;  %v2448_v6 = vmul.f32 0.03125, %v420_v30  ;;  %v2905_v30 = vld [vmem:[#allocation24_spill] sm:$0xff] }
 0x151   :  { %1714 = vpow2.f32 %v1610_v42  ;;  %v455_v32 = vrot.slane %v454_v41, 1  ;;  %v557_v43 = vrot.slane %v556_v50, 2  ;;  %v873_v24 = vrot.slane %v872_v17, 2 }
 0x152   :  { %1716 = vpow2.f32 %v1611_v8  ;;  %v1268_v16 = vrot.slane %v1178_v35, %v1978_v55  ;;  %v580_v51 = vmul.f32 0.03125, %v524_v57  ;;  %v588_v9 = vmul.f32 %v2448_v6, %v2448_v6  ;;  %v2906_v57 = vld [vmem:[#allocation25_spill] sm:$0xff] }
 0x153   :  { %1718 = vpow2.f32 %v1612_v15  ;;  %v456_v58 = vadd.f32 %v455_v32, %v454_v41  ;;  %v558_v3 = vadd.f32 %v557_v43, %v556_v50  ;;  %v874_v4 = vadd.f32 %v873_v24, %v872_v17 }
 0x154   :  { %1720 = vpow2.f32 %v1613_v46  ;;  %v1297_v56 = vadd.f32 %v1268_v16, %v1233_v20  ;;  %v1298_v45 = vadd.f32 %v1268_v16, %v1234_v52  ;;  %v1299_v23 = vadd.f32 %v1268_v16, %v1235_v36  ;;  %v2904_v52 = vld [vmem:[#allocation23_spill] sm:$0xff] }
 0x155   :  { %v1300_v61 = vadd.f32 %v1268_v16, %v1236_v47  ;;  %v596_v42 = vsub.f32 %v580_v51, %v588_v9  ;;  %v559_v37 = vrot.slane %v558_v3, 1  ;;  %v2453_v26 = vmul.f32 0.03125, %v456_v58 }
 0x156   :  { %v1626_v62 = vmul.f32 -1.442695, %v1297_v56  ;;  %v1627_v10 = vmul.f32 -1.442695, %v1298_v45  ;;  %v1628_v2 = vmul.f32 -1.442695, %v1299_v23  ;;  %v974_v33 = vadd.f32 %v2405_v0, %v933_v13 }
 0x157   :  { %v1629_v28 = vmul.f32 -1.442695, %v1300_v61  ;;  %v604_v38 = vadd.f32 1e-05, %v596_v42  ;;  %v560_v15 = vadd.f32 %v559_v37, %v558_v3  ;;  %v592_v17 = vmul.f32 %v2453_v26, %v2453_v26 }
 0x158   :  { %1722 = vpow2.f32 %v1626_v62  ;;  %v875_v46 = vrot.slane %v874_v4, 1  ;;  %v975_v20 = vrot.slane %v974_v33, 4  ;;  %v906_v36 = vadd.f32 %v2378_v11, %v2904_v52 }
 0x159   :  { %1724 = vpow2.f32 %v1627_v10  ;;  %v584_v47 = vmul.f32 0.03125, %v560_v15  ;;  %v949_v25 = vmul.f32 %v2904_v52, %v2904_v52  ;;  %v478_v0 = vmul.f32 %v2905_v30, %v2905_v30  ;;  %v2907_v10 = vld [vmem:[#allocation26_spill] sm:$0xff] }
 0x15a   :  { %1726 = vpow2.f32 %v1628_v2  ;;  %v876_v13 = vadd.f32 %v875_v46, %v874_v4  ;;  %v976_v7 = vadd.f32 %v975_v20, %v974_v33  ;;  %v907_v41 = vrot.slane %v906_v36, 4  ;;  %v2908_v33 = vld [vmem:[#allocation27_spill] sm:$0xff] }
 0x15b   :  { %v1715_v8 = vpop.eup %1714  ;;  %1728 = vpow2.f32 %v1629_v28  ;;  %v600_v50 = vsub.f32 %v584_v47, %v592_v17  ;;  %v1010_v35 = vadd.f32 %v2424_v40, %v949_v25  ;;  %v494_v11 = vmul.f32 %v2906_v57, %v2906_v57  ;;  %v2909_v17 = vld [vmem:[#allocation28_spill] sm:$0xff]  ;;  %v2910_v25 = vld [vmem:[#allocation29_spill] sm:$0xff] }
 0x15c   :  { %v1717_v32 = vpop.eup %1716  ;;  %v1409_v43 = vadd.f32 1.0, %v1715_v8  ;;  %1730 = vrsqrt.f32 %v604_v38  ;;  %v977_v24 = vrot.slane %v976_v7, 2  ;;  %v2467_v16 = vmul.f32 0.03125, %v876_v13 }
 0x15d   :  { %v1719_v51 = vpop.eup %1718  ;;  %v1410_v9 = vadd.f32 1.0, %v1717_v32  ;;  %v608_v58 = vadd.f32 1e-05, %v600_v50  ;;  %v908_v3 = vadd.f32 %v907_v41, %v906_v36  ;;  %v1011_v4 = vrot.slane %v1010_v35, 4 }
 0x15e   :  { %v1721_v56 = vpop.eup %1720  ;;  %v1411_v45 = vadd.f32 1.0, %v1719_v51  ;;  %1732 = vrcp.f32 %v1409_v43  ;;  %v978_v23 = vadd.f32 %v977_v24, %v976_v7  ;;  %v1044_v40 = vmul.f32 %v2467_v16, %v2467_v16 }
 0x15f   :  { %v1412_v61 = vadd.f32 1.0, %v1721_v56  ;;  %1734 = vrcp.f32 %v1410_v9  ;;  %v909_v42 = vrot.slane %v908_v3, 2  ;;  %v1012_v37 = vadd.f32 %v1011_v4, %v1010_v35  ;;  %v2911_v9 = vld [vmem:[#allocation30_spill] sm:$0xff] }
 0x160   :  { %1736 = vrcp.f32 %v1411_v45  ;;  %v979_v62 = vrot.slane %v978_v23, 1  ;;  %v934_v2 = vmul.f32 %v2907_v10, %v2907_v10  ;;  %v2475_v28 = vmul.f32 %v2908_v33, %v2908_v33 }
 0x161   :  { %1738 = vrcp.f32 %v1412_v61  ;;  %v910_v38 = vadd.f32 %v909_v42, %v908_v3  ;;  %v1013_v15 = vrot.slane %v1012_v37, 2  ;;  %v421_v46 = vadd.f32 %v2909_v17, %v2905_v30 }
 0x162   :  { %v1723_v20 = vpop.eup %1722  ;;  %1740 = vrsqrt.f32 %v608_v58  ;;  %v980_v36 = vadd.f32 %v979_v62, %v978_v23  ;;  %v479_v47 = vmul.f32 %v2909_v17, %v2909_v17  ;;  %v457_v13 = vadd.f32 %v2910_v25, %v2906_v57  ;;  %v2492_v62 = vld [vmem:[%s2792_s2] sm:$0xf] }
 0x163   :  { %v1725_v7 = vpop.eup %1724  ;;  %v1425_v41 = vadd.f32 1.0, %v1723_v20  ;;  %v911_v8 = vrot.slane %v910_v38, 1  ;;  %v1014_v50 = vadd.f32 %v1013_v15, %v1012_v37  ;;  %v495_v35 = vmul.f32 %v2910_v25, %v2910_v25 }
 0x164   :  { %v1727_v32 = vpop.eup %1726  ;;  %v1426_v43 = vadd.f32 1.0, %v1725_v7  ;;  %v1036_v24 = vmul.f32 0.03125, %v980_v36  ;;  %v525_v51 = vadd.f32 %v479_v47, %v478_v0  ;;  %v2487_v58 = vadd.f32 %v2911_v9, %v2907_v10 }
 0x165   :  { %v1729_v3 = vpop.eup %1728  ;;  %v1427_v4 = vadd.f32 1.0, %v1727_v32  ;;  %1742 = vrcp.f32 %v1425_v41  ;;  %v912_v56 = vadd.f32 %v911_v8, %v910_v38  ;;  %v1015_v45 = vrot.slane %v1014_v50, 1 }
 0x166   :  { %v1731_v23 = vpop.eup %1730  ;;  %v1428_v61 = vadd.f32 1.0, %v1729_v3  ;;  %1744 = vrcp.f32 %v1426_v43  ;;  %v1052_v42 = vsub.f32 %v1036_v24, %v1044_v40  ;;  %v561_v37 = vadd.f32 %v495_v35, %v494_v11  ;;  %v2912_v40 = vld [vmem:[#allocation31_spill] sm:$0xff] }
 0x167   :  { %1746 = vrcp.f32 %v1427_v4  ;;  %v620_v0 = vmul.f32 %v2492_v62, %v1731_v23  ;;  %v1016_v15 = vadd.f32 %v1015_v45, %v1014_v50  ;;  %v2495_v20 = vmul.f32 0.03125, %v912_v56 }
 0x168   :  { %v1733_v36 = vpop.eup %1732  ;;  %1748 = vrcp.f32 %v1428_v61  ;;  %v1060_v38 = vadd.f32 1e-05, %v1052_v42  ;;  %v935_v47 = vmul.f32 %v2911_v9, %v2911_v9  ;;  %v2501_v11 = vadd.f32 %v2912_v40, %v2908_v33  ;;  %v2913_v42 = vld [vmem:[#allocation32_spill] sm:$0xff] }
 0x169   :  { %v1735_v7 = vpop.eup %1734  ;;  %v1505_v41 = vmul.f32 %v1733_v36, %v2385_v27  ;;  %v628_v8 = vmul.f32 %v620_v0, %v2448_v6  ;;  %v733_v35 = vrot.slane %v620_v0, %v1976_v54  ;;  %v1040_v50 = vmul.f32 0.03125, %v1016_v15  ;;  %v2914_v15 = vld [vmem:[#allocation33_spill] sm:$0xff] }
 0x16a   :  { %v1737_v32 = vpop.eup %1736  ;;  %v1506_v43 = vmul.f32 %v1735_v7, %v2387_v34  ;;  %1750 = vrsqrt.f32 %v1060_v38  ;;  %v1048_v24 = vmul.f32 %v2495_v20, %v2495_v20  ;;  %v981_v3 = vadd.f32 %v935_v47, %v934_v2 }
 0x16b   :  { %v1739_v4 = vpop.eup %1738  ;;  %v1507_v56 = vmul.f32 %v1737_v32, %v2389_v39  ;;  %1538 = vst.msk [vmem:[%s2793_s3 + $0x20] sm:$0xff] %vm1533_vm1, %v1505_v41  ;;  %v662_v6 = vrot.slane %v628_v8, %v1974_v53  ;;  %v762_v27 = vmul.f32 %v733_v35, %v2079_v60  ;;  %v763_v45 = vmul.f32 %v733_v35, %v2093_v21 }
 0x16c   :  { %v1741_v34 = vpop.eup %1740  ;;  %v1508_v23 = vmul.f32 %v1739_v4, %v2395_v48  ;;  %1539 = vst.msk [vmem:[%s2793_s3 + $0x28] sm:$0xff] %vm1533_vm1, %v1506_v43  ;;  %v764_v39 = vmul.f32 %v733_v35, %v2126_v19  ;;  %v765_v2 = vmul.f32 %v733_v35, %v2893_v5  ;;  %v1056_v61 = vsub.f32 %v1040_v50, %v1048_v24 }
 0x16d   :  { %1540 = vst.msk [vmem:[%s2793_s3 + $0x30] sm:$0xff] %vm1533_vm1, %v1507_v56  ;;  %v700_v60 = vrot.slane %v662_v6, 7  ;;  %v624_v21 = vmul.f32 %v2492_v62, %v1741_v34  ;;  %v951_v48 = vmul.f32 %v2912_v40, %v2912_v40  ;;  %v422_v0 = vadd.f32 %v421_v46, %v2913_v42 }
 0x16e   :  { %1541 = vst.msk [vmem:[%s2793_s3 + $0x38] sm:$0xff] %vm1533_vm1, %v1508_v23  ;;  %v1064_v19 = vadd.f32 1e-05, %v1056_v61  ;;  %v480_v5 = vmul.f32 %v2913_v42, %v2913_v42  ;;  %v458_v36 = vadd.f32 %v457_v13, %v2914_v15  ;;  %v496_v38 = vmul.f32 %v2914_v15, %v2914_v15 }
 0x16f   :  { %v1743_v47 = vpop.eup %1742  ;;  %v716_v7 = vsub.f32 %v2492_v62, %v700_v60  ;;  %v632_v41 = vmul.f32 %v624_v21, %v2453_v26  ;;  %v749_v46 = vrot.slane %v624_v21, %v1976_v54  ;;  %v1017_v8 = vadd.f32 %v951_v48, %v2475_v28  ;;  %v2917_v60 = vld [vmem:[#allocation37_spill] sm:$0xff] }
 0x170   :  { %v1745_v35 = vpop.eup %1744  ;;  %v1521_v50 = vmul.f32 %v1743_v47, %v2413_v31  ;;  %1752 = vrsqrt.f32 %v1064_v19  ;;  %v526_v32 = vadd.f32 %v525_v51, %v480_v5  ;;  %v562_v43 = vadd.f32 %v561_v37, %v496_v38  ;;  %v2918_v5 = vld [vmem:[#allocation38_spill] sm:$0xff] }
 0x171   :  { %v1747_v24 = vpop.eup %1746  ;;  %v1522_v13 = vmul.f32 %v1745_v35, %v2415_v18  ;;  %v797_v4 = vrot.slane %v716_v7, %v1978_v55  ;;  %v690_v56 = vrot.slane %v632_v41, %v1974_v53  ;;  %v778_v6 = vmul.f32 %v749_v46, %v2081_v1 }
 0x172   :  { %v1749_v26 = vpop.eup %1748  ;;  %v1523_v34 = vmul.f32 %v1747_v24, %v2417_v63  ;;  %1554 = vst.msk [vmem:[%s2793_s3 + $0xa0] sm:$0xff] %vm1533_vm1, %v1521_v50  ;;  %v779_v31 = vmul.f32 %v749_v46, %v2095_v22  ;;  %v780_v28 = vmul.f32 %v749_v46, %v2888_v44  ;;  %v781_v18 = vmul.f32 %v749_v46, %v2894_v12 }
 0x173   :  { %v1524_v51 = vmul.f32 %v1749_v26, %v2419_v49  ;;  %1555 = vst.msk [vmem:[%s2793_s3 + $0xa8] sm:$0xff] %vm1533_vm1, %v1522_v13  ;;  %v2563_v1 = vadd.f32 %v797_v4, %v762_v27  ;;  %v2565_v63 = vadd.f32 %v797_v4, %v763_v45  ;;  %v2567_v37 = vadd.f32 %v797_v4, %v764_v39  ;;  %v2915_v49 = vld [vmem:[#allocation35_spill] sm:$0xff]  ;;  %v2916_v39 = vld [vmem:[#allocation36_spill] sm:$0xff]  ;;  %v2919_v13 = vld [vmem:[#allocation18_spill] sm:$0xff] }
 0x174   :  { %v1751_v23 = vpop.eup %1750  ;;  %1556 = vst.msk [vmem:[%s2793_s3 + $0xb0] sm:$0xff] %vm1533_vm1, %v1523_v34  ;;  %v2573_v22 = vadd.f32 %v797_v4, %v765_v2  ;;  %v704_v44 = vrot.slane %v690_v56, 7  ;;  %v878_v12 = vadd.f32 %v2487_v58, %v2915_v49  ;;  %v936_v27 = vmul.f32 %v2915_v49, %v2915_v49 }
 0x175   :  { %1557 = vst.msk [vmem:[%s2793_s3 + $0xb8] sm:$0xff] %vm1533_vm1, %v1524_v51  ;;  %v1079_v45 = vmul.f32 %v1751_v23, %v2892_v29  ;;  %v2586_v61 = vadd.f32 %v2501_v11, %v2916_v39  ;;  %v952_v2 = vmul.f32 %v2916_v39, %v2916_v39  ;;  %v423_v21 = vadd.f32 %v422_v0, %v2917_v60  ;;  %v2920_v51 = vld [vmem:[#allocation22_spill] sm:$0xff] }
 0x176   :  { %v720_v58 = vsub.f32 %v2492_v62, %v704_v44  ;;  %v2592_v48 = vadd.f32 %v981_v3, %v936_v27  ;;  %v481_v19 = vmul.f32 %v2917_v60, %v2917_v60  ;;  %v459_v38 = vadd.f32 %v458_v36, %v2918_v5 }
 0x177   :  { %v1087_v47 = vmul.f32 %v1079_v45, %v2467_v16  ;;  %v1192_v7 = vrot.slane %v1079_v45, %v1976_v54  ;;  %v2599_v11 = vadd.f32 %v1017_v8, %v952_v2  ;;  %v424_v41 = vrot.slane %v423_v21, 4  ;;  %v2921_v2 = vld [vmem:[#allocation39_spill] sm:$0xff] }
 0x178   :  { %v813_v46 = vrot.slane %v720_v58, %v1978_v55  ;;  %v527_v35 = vadd.f32 %v526_v32, %v481_v19  ;;  %v460_v0 = vrot.slane %v459_v38, 4  ;;  %v497_v3 = vmul.f32 %v2918_v5, %v2918_v5 }
 0x179   :  { %v1121_v50 = vrot.slane %v1087_v47, %v1974_v53  ;;  %v1221_v24 = vmul.f32 %v1192_v7, %v2087_v14  ;;  %v1222_v36 = vmul.f32 %v1192_v7, %v2101_v59  ;;  %v1223_v16 = vmul.f32 %v1192_v7, %v2919_v13 }
 0x17a   :  { %v1753_v4 = vpop.eup %1752  ;;  %v2608_v56 = vadd.f32 %v813_v46, %v778_v6  ;;  %v2610_v8 = vadd.f32 %v813_v46, %v779_v31  ;;  %v2612_v26 = vadd.f32 %v813_v46, %v780_v28  ;;  %v2614_v32 = vadd.f32 %v813_v46, %v781_v18 }
 0x17b   :  { %v1159_v34 = vrot.slane %v1121_v50, 7  ;;  %v1224_v23 = vmul.f32 %v1192_v7, %v2920_v51  ;;  %v1083_v44 = vmul.f32 %v1753_v4, %v2892_v29  ;;  %v425_v27 = vadd.f32 %v424_v41, %v423_v21  ;;  %v2922_v41 = vld [vmem:[#allocation15_spill] sm:$0xff] }
 0x17c   :  { %v528_v14 = vrot.slane %v527_v35, 4  ;;  %v461_v45 = vadd.f32 %v460_v0, %v459_v38  ;;  %v563_v59 = vadd.f32 %v562_v43, %v497_v3  ;;  %v879_v58 = vadd.f32 %v878_v12, %v2921_v2  ;;  %v2923_v43 = vld [vmem:[#allocation16_spill] sm:$0xff]  ;;  %v2924_v12 = vld [vmem:[#allocation19_spill] sm:$0xff] }
 0x17d   :  { %v1175_v6 = vsub.f32 %v2892_v29, %v1159_v34  ;;  %v1091_v31 = vmul.f32 %v1083_v44, %v2495_v20  ;;  %v1208_v28 = vrot.slane %v1083_v44, %v1976_v54  ;;  %v426_v19 = vrot.slane %v425_v27, 2 }
 0x17e   :  { %v529_v18 = vadd.f32 %v528_v14, %v527_v35  ;;  %v462_v47 = vrot.slane %v461_v45, 2  ;;  %v564_v46 = vrot.slane %v563_v59, 4  ;;  %v880_v50 = vrot.slane %v879_v58, 4 }
 0x17f   :  { %v1256_v7 = vrot.slane %v1175_v6, %v1978_v55  ;;  %v1149_v21 = vrot.slane %v1091_v31, %v1974_v53  ;;  %v1237_v38 = vmul.f32 %v1208_v28, %v2922_v41  ;;  %v1238_v0 = vmul.f32 %v1208_v28, %v2923_v43 }
 0x180   :  { %v1239_v3 = vmul.f32 %v1208_v28, %v2924_v12  ;;  %v1240_v13 = vmul.f32 %v1208_v28, %v2904_v52  ;;  %v427_v20 = vadd.f32 %v426_v19, %v425_v27  ;;  %v530_v4 = vrot.slane %v529_v18, 2 }
 0x181   :  { %v1285_v34 = vadd.f32 %v1256_v7, %v1221_v24  ;;  %v1286_v51 = vadd.f32 %v1256_v7, %v1222_v36  ;;  %v1287_v35 = vadd.f32 %v1256_v7, %v1223_v16  ;;  %v1288_v44 = vadd.f32 %v1256_v7, %v1224_v23 }
 0x182   :  { %v1163_v14 = vrot.slane %v1149_v21, 7  ;;  %v428_v39 = vrot.slane %v427_v20, 1  ;;  %v531_v40 = vadd.f32 %v530_v4, %v529_v18  ;;  %v463_v6 = vadd.f32 %v462_v47, %v461_v45 }
 0x183   :  { %v1614_v33 = vmul.f32 -1.442695, %v1285_v34  ;;  %v1615_v31 = vmul.f32 -1.442695, %v1286_v51  ;;  %v1616_v49 = vmul.f32 -1.442695, %v1287_v35  ;;  %v565_v41 = vadd.f32 %v564_v46, %v563_v59 }
 0x184   :  { %v1617_v9 = vmul.f32 -1.442695, %v1288_v44  ;;  %v1179_v43 = vsub.f32 %v2892_v29, %v1163_v14  ;;  %v429_v12 = vadd.f32 %v428_v39, %v427_v20  ;;  %v532_v10 = vrot.slane %v531_v40, 1 }
 0x185   :  { %1754 = vpow2.f32 %v1614_v33  ;;  %v464_v52 = vrot.slane %v463_v6, 1  ;;  %v566_v27 = vrot.slane %v565_v41, 2  ;;  %v881_v24 = vadd.f32 %v880_v50, %v879_v58 }
 0x186   :  { %1756 = vpow2.f32 %v1615_v31  ;;  %v1272_v36 = vrot.slane %v1179_v43, %v1978_v55  ;;  %v533_v16 = vadd.f32 %v532_v10, %v531_v40  ;;  %v2630_v23 = vmul.f32 0.03125, %v429_v12 }
 0x187   :  { %1758 = vpow2.f32 %v1616_v49  ;;  %v465_v45 = vadd.f32 %v464_v52, %v463_v6  ;;  %v567_v28 = vadd.f32 %v566_v27, %v565_v41  ;;  %v882_v19 = vrot.slane %v881_v24, 2 }
 0x188   :  { %1760 = vpow2.f32 %v1617_v9  ;;  %v1301_v59 = vadd.f32 %v1272_v36, %v1237_v38  ;;  %v1302_v18 = vadd.f32 %v1272_v36, %v1238_v0  ;;  %v1303_v47 = vadd.f32 %v1272_v36, %v1239_v3  ;;  %v2925_v0 = vld [vmem:[#allocation40_spill] sm:$0xff] }
 0x189   :  { %v1304_v39 = vadd.f32 %v1272_v36, %v1240_v13  ;;  %v581_v46 = vmul.f32 0.03125, %v533_v16  ;;  %v589_v33 = vmul.f32 %v2630_v23, %v2630_v23  ;;  %v568_v58 = vrot.slane %v567_v28, 1 }
 0x18a   :  { %v1630_v50 = vmul.f32 -1.442695, %v1301_v59  ;;  %v1631_v7 = vmul.f32 -1.442695, %v1302_v18  ;;  %v1632_v21 = vmul.f32 -1.442695, %v1303_v47  ;;  %v883_v10 = vadd.f32 %v882_v19, %v881_v24 }
 0x18b   :  { %v1633_v40 = vmul.f32 -1.442695, %v1304_v39  ;;  %v597_v20 = vsub.f32 %v581_v46, %v589_v33  ;;  %v569_v49 = vadd.f32 %v568_v58, %v567_v28  ;;  %v2634_v4 = vmul.f32 0.03125, %v465_v45 }
 0x18c   :  { %1762 = vpow2.f32 %v1630_v50  ;;  %v884_v9 = vrot.slane %v883_v10, 1  ;;  %v937_v38 = vmul.f32 %v2921_v2, %v2921_v2  ;;  %v915_v3 = vadd.f32 %v2586_v61, %v2925_v0 }
 0x18d   :  { %1764 = vpow2.f32 %v1631_v7  ;;  %v605_v13 = vadd.f32 1e-05, %v597_v20  ;;  %v585_v34 = vmul.f32 0.03125, %v569_v49  ;;  %v593_v51 = vmul.f32 %v2634_v4, %v2634_v4 }
 0x18e   :  { %1766 = vpow2.f32 %v1632_v21  ;;  %v983_v35 = vadd.f32 %v2592_v48, %v937_v38  ;;  %v916_v44 = vrot.slane %v915_v3, 4  ;;  %v953_v31 = vmul.f32 %v2925_v0, %v2925_v0 }
 0x18f   :  { %v1755_v14 = vpop.eup %1754  ;;  %1768 = vpow2.f32 %v1633_v40  ;;  %v601_v6 = vsub.f32 %v585_v34, %v593_v51  ;;  %v885_v27 = vadd.f32 %v884_v9, %v883_v10 }
 0x190   :  { %v1757_v41 = vpop.eup %1756  ;;  %v1413_v43 = vadd.f32 1.0, %v1755_v14  ;;  %1770 = vrsqrt.f32 %v605_v13  ;;  %v984_v61 = vrot.slane %v983_v35, 4  ;;  %v917_v24 = vadd.f32 %v916_v44, %v915_v3 }
 0x191   :  { %v1759_v12 = vpop.eup %1758  ;;  %v1414_v52 = vadd.f32 1.0, %v1757_v41  ;;  %v1019_v36 = vadd.f32 %v2599_v11, %v953_v31  ;;  %v609_v48 = vadd.f32 1e-05, %v601_v6  ;;  %v2646_v50 = vmul.f32 0.03125, %v885_v27 }
 0x192   :  { %v1761_v16 = vpop.eup %1760  ;;  %v1415_v45 = vadd.f32 1.0, %v1759_v12  ;;  %1772 = vrcp.f32 %v1413_v43  ;;  %v985_v28 = vadd.f32 %v984_v61, %v983_v35  ;;  %v918_v59 = vrot.slane %v917_v24, 2 }
 0x193   :  { %v1416_v19 = vadd.f32 1.0, %v1761_v16  ;;  %1774 = vrcp.f32 %v1414_v52  ;;  %v1020_v18 = vrot.slane %v1019_v36, 4  ;;  %v1045_v44 = vmul.f32 %v2646_v50, %v2646_v50 }
 0x194   :  { %1776 = vrcp.f32 %v1415_v45  ;;  %v986_v47 = vrot.slane %v985_v28, 2  ;;  %v919_v39 = vadd.f32 %v918_v59, %v917_v24 }
 0x195   :  { %1778 = vrcp.f32 %v1416_v19  ;;  %v1021_v46 = vadd.f32 %v1020_v18, %v1019_v36 }
 0x196   :  { %v1763_v33 = vpop.eup %1762  ;;  %1780 = vrsqrt.f32 %v609_v48  ;;  %v987_v58 = vadd.f32 %v986_v47, %v985_v28  ;;  %v920_v21 = vrot.slane %v919_v39, 1 }
 0x197   :  { %v1765_v11 = vpop.eup %1764  ;;  %v1429_v7 = vadd.f32 1.0, %v1763_v33  ;;  %v1022_v10 = vrot.slane %v1021_v46, 2 }
 0x198   :  { %v1767_v40 = vpop.eup %1766  ;;  %v1430_v20 = vadd.f32 1.0, %v1765_v11  ;;  %v988_v49 = vrot.slane %v987_v58, 1  ;;  %v921_v3 = vadd.f32 %v920_v21, %v919_v39 }
 0x199   :  { %v1769_v9 = vpop.eup %1768  ;;  %v1431_v38 = vadd.f32 1.0, %v1767_v40  ;;  %1782 = vrcp.f32 %v1429_v7  ;;  %v1023_v13 = vadd.f32 %v1022_v10, %v1021_v46 }
 0x19a   :  { %v1771_v34 = vpop.eup %1770  ;;  %v1432_v51 = vadd.f32 1.0, %v1769_v9  ;;  %1784 = vrcp.f32 %v1430_v20  ;;  %v989_v35 = vadd.f32 %v988_v49, %v987_v58  ;;  %v2651_v31 = vmul.f32 0.03125, %v921_v3 }
 0x19b   :  { %1786 = vrcp.f32 %v1431_v38  ;;  %v621_v14 = vmul.f32 %v2492_v62, %v1771_v34  ;;  %v1024_v6 = vrot.slane %v1023_v13, 1 }
 0x19c   :  { %v1773_v41 = vpop.eup %1772  ;;  %1788 = vrcp.f32 %v1432_v51  ;;  %v1037_v43 = vmul.f32 0.03125, %v989_v35  ;;  %v1049_v48 = vmul.f32 %v2651_v31, %v2651_v31 }
 0x19d   :  { %v1775_v61 = vpop.eup %1774  ;;  %v1509_v12 = vmul.f32 %v1773_v41, %v2563_v1  ;;  %v629_v52 = vmul.f32 %v621_v14, %v2630_v23  ;;  %v737_v27 = vrot.slane %v621_v14, %v1976_v54  ;;  %v1025_v24 = vadd.f32 %v1024_v6, %v1023_v13 }
 0x19e   :  { %v1777_v36 = vpop.eup %1776  ;;  %v1510_v16 = vmul.f32 %v1775_v61, %v2565_v63  ;;  %v1053_v45 = vsub.f32 %v1037_v43, %v1045_v44 }
 0x19f   :  { %v1779_v28 = vpop.eup %1778  ;;  %v1511_v19 = vmul.f32 %v1777_v36, %v2567_v37  ;;  %1542 = vst.msk [vmem:[%s2793_s3 + $0x40] sm:$0xff] %vm1533_vm1, %v1509_v12  ;;  %v669_v1 = vrot.slane %v629_v52, %v1974_v53  ;;  %v766_v23 = vmul.f32 %v737_v27, %v2905_v30  ;;  %v767_v59 = vmul.f32 %v737_v27, %v2909_v17  ;;  %v2926_v12 = vld [vmem:[#allocation26_spill] sm:$0xff]  ;;  %v2928_v36 = vld [vmem:[#allocation35_spill] sm:$0xff] }
 0x1a0   :  { %v1781_v18 = vpop.eup %1780  ;;  %v1512_v63 = vmul.f32 %v1779_v28, %v2573_v22  ;;  %1543 = vst.msk [vmem:[%s2793_s3 + $0x48] sm:$0xff] %vm1533_vm1, %v1510_v16  ;;  %v768_v37 = vmul.f32 %v737_v27, %v2913_v42  ;;  %v769_v47 = vmul.f32 %v737_v27, %v2917_v60  ;;  %v1061_v39 = vadd.f32 1e-05, %v1053_v45  ;;  %v2927_v27 = vld [vmem:[#allocation30_spill] sm:$0xff] }
 0x1a1   :  { %1544 = vst.msk [vmem:[%s2793_s3 + $0x50] sm:$0xff] %vm1533_vm1, %v1511_v19  ;;  %v701_v30 = vrot.slane %v669_v1, 7  ;;  %v625_v17 = vmul.f32 %v2492_v62, %v1781_v18  ;;  %v1041_v46 = vmul.f32 0.03125, %v1025_v24 }
 0x1a2   :  { %1545 = vst.msk [vmem:[%s2793_s3 + $0x58] sm:$0xff] %vm1533_vm1, %v1512_v63  ;;  %1790 = vrsqrt.f32 %v1061_v39 }
 0x1a3   :  { %v1783_v22 = vpop.eup %1782  ;;  %v717_v42 = vsub.f32 %v2492_v62, %v701_v30  ;;  %v633_v60 = vmul.f32 %v625_v17, %v2634_v4  ;;  %v753_v33 = vrot.slane %v625_v17, %v1976_v54  ;;  %v1057_v58 = vsub.f32 %v1041_v46, %v1049_v48  ;;  %v2929_v30 = vld [vmem:[#allocation27_spill] sm:$0xff] }
 0x1a4   :  { %v1785_v11 = vpop.eup %1784  ;;  %v1525_v7 = vmul.f32 %v1783_v22, %v2608_v56  ;;  %v2930_v17 = vld [vmem:[#allocation31_spill] sm:$0xff]  ;;  %v2931_v22 = vld [vmem:[#allocation36_spill] sm:$0xff] }
 0x1a5   :  { %v1787_v21 = vpop.eup %1786  ;;  %v1526_v10 = vmul.f32 %v1785_v11, %v2610_v8  ;;  %v801_v40 = vrot.slane %v717_v42, %v1978_v55  ;;  %v697_v20 = vrot.slane %v633_v60, %v1974_v53  ;;  %v782_v49 = vmul.f32 %v753_v33, %v2906_v57 }
 0x1a6   :  { %v1789_v9 = vpop.eup %1788  ;;  %v1527_v38 = vmul.f32 %v1787_v21, %v2612_v26  ;;  %1558 = vst.msk [vmem:[%s2793_s3 + $0xc0] sm:$0xff] %vm1533_vm1, %v1525_v7  ;;  %v783_v4 = vmul.f32 %v753_v33, %v2910_v25  ;;  %v784_v56 = vmul.f32 %v753_v33, %v2914_v15  ;;  %v785_v8 = vmul.f32 %v753_v33, %v2918_v5 }
 0x1a7   :  { %v1528_v3 = vmul.f32 %v1789_v9, %v2614_v32  ;;  %1559 = vst.msk [vmem:[%s2793_s3 + $0xc8] sm:$0xff] %vm1533_vm1, %v1526_v10  ;;  %v2704_v57 = vadd.f32 %v801_v40, %v766_v23  ;;  %v2706_v26 = vadd.f32 %v801_v40, %v767_v59  ;;  %v2708_v13 = vadd.f32 %v801_v40, %v768_v37 }
 0x1a8   :  { %1560 = vst.msk [vmem:[%s2793_s3 + $0xd0] sm:$0xff] %vm1533_vm1, %v1527_v38  ;;  %v2714_v25 = vadd.f32 %v801_v40, %v769_v47  ;;  %v705_v15 = vrot.slane %v697_v20, 7  ;;  %v1065_v5 = vadd.f32 1e-05, %v1057_v58 }
 0x1a9   :  { %1561 = vst.msk [vmem:[%s2793_s3 + $0xd8] sm:$0xff] %vm1533_vm1, %v1528_v3 }
 0x1aa   :  { %v721_v32 = vsub.f32 %v2492_v62, %v705_v15  ;;  %1792 = vrsqrt.f32 %v1065_v5 }
 0x1ac   :  { %v1791_v34 = vpop.eup %1790  ;;  %v817_v51 = vrot.slane %v721_v32, %v1978_v55 }
 0x1ad   :  { %v1080_v35 = vmul.f32 %v1791_v34, %v2892_v29 }
 0x1ae   :  { %v2723_v44 = vadd.f32 %v817_v51, %v782_v49  ;;  %v2725_v14 = vadd.f32 %v817_v51, %v783_v4  ;;  %v2727_v6 = vadd.f32 %v817_v51, %v784_v56  ;;  %v2729_v41 = vadd.f32 %v817_v51, %v785_v8 }
 0x1af   :  { %v1088_v43 = vmul.f32 %v1080_v35, %v2646_v50  ;;  %v1196_v61 = vrot.slane %v1080_v35, %v1976_v54 }
 0x1b1   :  { %v1128_v62 = vrot.slane %v1088_v43, %v1974_v53  ;;  %v1225_v52 = vmul.f32 %v1196_v61, %v2926_v12  ;;  %v1226_v24 = vmul.f32 %v1196_v61, %v2927_v27  ;;  %v1227_v16 = vmul.f32 %v1196_v61, %v2928_v36 }
 0x1b2   :  { %v1228_v45 = vmul.f32 %v1196_v61, %v2921_v2 }
 0x1b3   :  { %v1160_v48 = vrot.slane %v1128_v62, 7 }
 0x1b4   :  { %v1793_v28 = vpop.eup %1792 }
 0x1b5   :  { %v1176_v19 = vsub.f32 %v2892_v29, %v1160_v48  ;;  %v1084_v1 = vmul.f32 %v1793_v28, %v2892_v29 }
 0x1b7   :  { %v1260_v50 = vrot.slane %v1176_v19, %v1978_v55  ;;  %v1092_v23 = vmul.f32 %v1084_v1, %v2651_v31  ;;  %v1212_v59 = vrot.slane %v1084_v1, %v1976_v54 }
 0x1b9   :  { %v1289_v18 = vadd.f32 %v1260_v50, %v1225_v52  ;;  %v1290_v63 = vadd.f32 %v1260_v50, %v1226_v24  ;;  %v1291_v37 = vadd.f32 %v1260_v50, %v1227_v16  ;;  %v1292_v47 = vadd.f32 %v1260_v50, %v1228_v45 }
 0x1ba   :  { %v1156_v39 = vrot.slane %v1092_v23, %v1974_v53  ;;  %v1241_v2 = vmul.f32 %v1212_v59, %v2929_v30  ;;  %v1242_v46 = vmul.f32 %v1212_v59, %v2930_v17  ;;  %v1243_v42 = vmul.f32 %v1212_v59, %v2931_v22 }
 0x1bb   :  { %v1618_v60 = vmul.f32 -1.442695, %v1289_v18  ;;  %v1619_v33 = vmul.f32 -1.442695, %v1290_v63  ;;  %v1620_v58 = vmul.f32 -1.442695, %v1291_v37  ;;  %v1244_v11 = vmul.f32 %v1212_v59, %v2925_v0 }
 0x1bc   :  { %v1621_v31 = vmul.f32 -1.442695, %v1292_v47  ;;  %v1164_v7 = vrot.slane %v1156_v39, 7 }
 0x1bd   :  { %1794 = vpow2.f32 %v1618_v60 }
 0x1be   :  { %1796 = vpow2.f32 %v1619_v33  ;;  %v1180_v54 = vsub.f32 %v2892_v29, %v1164_v7 }
 0x1bf   :  { %1798 = vpow2.f32 %v1620_v58 }
 0x1c0   :  { %1800 = vpow2.f32 %v1621_v31  ;;  %v1276_v53 = vrot.slane %v1180_v54, %v1978_v55 }
 0x1c2   :  { %v1305_v21 = vadd.f32 %v1276_v53, %v1241_v2  ;;  %v1306_v10 = vadd.f32 %v1276_v53, %v1242_v46  ;;  %v1307_v40 = vadd.f32 %v1276_v53, %v1243_v42  ;;  %v1308_v20 = vadd.f32 %v1276_v53, %v1244_v11 }
 0x1c4   :  { %v1634_v49 = vmul.f32 -1.442695, %v1305_v21  ;;  %v1635_v9 = vmul.f32 -1.442695, %v1306_v10  ;;  %v1636_v38 = vmul.f32 -1.442695, %v1307_v40 }
 0x1c5   :  { %v1637_v4 = vmul.f32 -1.442695, %v1308_v20 }
 0x1c6   :  { %1802 = vpow2.f32 %v1634_v49 }
 0x1c7   :  { %v1795_v0 = vpop.eup %1794  ;;  %1804 = vpow2.f32 %v1635_v9 }
 0x1c8   :  { %v1797_v56 = vpop.eup %1796  ;;  %v1417_v8 = vadd.f32 1.0, %v1795_v0  ;;  %1806 = vpow2.f32 %v1636_v38 }
 0x1c9   :  { %v1799_v3 = vpop.eup %1798  ;;  %v1418_v29 = vadd.f32 1.0, %v1797_v56  ;;  %1808 = vpow2.f32 %v1637_v4 }
 0x1ca   :  { %v1801_v15 = vpop.eup %1800  ;;  %v1419_v5 = vadd.f32 1.0, %v1799_v3  ;;  %1810 = vrcp.f32 %v1417_v8 }
 0x1cb   :  { %v1420_v55 = vadd.f32 1.0, %v1801_v15  ;;  %1812 = vrcp.f32 %v1418_v29 }
 0x1cc   :  { %1814 = vrcp.f32 %v1419_v5 }
 0x1cd   :  { %1816 = vrcp.f32 %v1420_v55 }
 0x1d0   :  { %v1803_v32 = vpop.eup %1802 }
 0x1d1   :  { %v1805_v34 = vpop.eup %1804  ;;  %v1433_v51 = vadd.f32 1.0, %v1803_v32 }
 0x1d2   :  { %v1807_v35 = vpop.eup %1806  ;;  %v1434_v43 = vadd.f32 1.0, %v1805_v34 }
 0x1d3   :  { %v1809_v61 = vpop.eup %1808  ;;  %v1435_v62 = vadd.f32 1.0, %v1807_v35  ;;  %1818 = vrcp.f32 %v1433_v51 }
 0x1d4   :  { %v1811_v12 = vpop.eup %1810  ;;  %v1436_v52 = vadd.f32 1.0, %v1809_v61  ;;  %1820 = vrcp.f32 %v1434_v43 }
 0x1d5   :  { %v1813_v27 = vpop.eup %1812  ;;  %v1513_v24 = vmul.f32 %v1811_v12, %v2704_v57  ;;  %1822 = vrcp.f32 %v1435_v62 }
 0x1d6   :  { %v1815_v36 = vpop.eup %1814  ;;  %v1514_v16 = vmul.f32 %v1813_v27, %v2706_v26  ;;  %1824 = vrcp.f32 %v1436_v52 }
 0x1d7   :  { %v1817_v45 = vpop.eup %1816  ;;  %v1515_v48 = vmul.f32 %v1815_v36, %v2708_v13  ;;  %1546 = vst.msk [vmem:[%s2793_s3 + $0x60] sm:$0xff] %vm1533_vm1, %v1513_v24 }
 0x1d8   :  { %v1516_v28 = vmul.f32 %v1817_v45, %v2714_v25  ;;  %1547 = vst.msk [vmem:[%s2793_s3 + $0x68] sm:$0xff] %vm1533_vm1, %v1514_v16 }
 0x1d9   :  { %1548 = vst.msk [vmem:[%s2793_s3 + $0x70] sm:$0xff] %vm1533_vm1, %v1515_v48 }
 0x1da   :  { %1549 = vst.msk [vmem:[%s2793_s3 + $0x78] sm:$0xff] %vm1533_vm1, %v1516_v28 }
 0x1dd   :  { %v1819_v57 = vpop.eup %1818 }
 0x1de   :  { %v1821_v26 = vpop.eup %1820  ;;  %v1529_v13 = vmul.f32 %v1819_v57, %v2723_v44 }
 0x1df   :  { %v1823_v25 = vpop.eup %1822  ;;  %v1530_v19 = vmul.f32 %v1821_v26, %v2725_v14 }
 0x1e0   :  { %v1825_v1 = vpop.eup %1824  ;;  %v1531_v50 = vmul.f32 %v1823_v25, %v2727_v6  ;;  %1562 = vst.msk [vmem:[%s2793_s3 + $0xe0] sm:$0xff] %vm1533_vm1, %v1529_v13 }
 0x1e1   :  { %v1532_v23 = vmul.f32 %v1825_v1, %v2729_v41  ;;  %1563 = vst.msk [vmem:[%s2793_s3 + $0xe8] sm:$0xff] %vm1533_vm1, %v1530_v19 }
 0x1e2   :  { %1564 = vst.msk [vmem:[%s2793_s3 + $0xf0] sm:$0xff] %vm1533_vm1, %v1531_v50 }
 0x1e3   :  { %1565 = vst.msk [vmem:[%s2793_s3 + $0xf8] sm:$0xff] %vm1533_vm1, %v1532_v23 }

</bundles_post_ra>
